<compile_context>
chip_gen: v6e
topology: v6e:2x2x1
jax: 0.10.0
libtpu: 0.0.40
codegen_flags: <defaults>
</compile_context>

<pallas_src>
import math

import jax
import jax.numpy as jnp
import numpy as np
from jax.experimental import pallas as pl
from jax.experimental.pallas import tpu as pltpu

# ----------------------------- configuration --------------------------------
B = 2            # batch
C_IN = 3         # image channels
IMG = 16         # image height/width
PATCH = 8        # patch size (kernel == stride)
GRID_HW = IMG // PATCH
N_PATCH = GRID_HW * GRID_HW
N_TOK = N_PATCH + 1          # + CLS token
PDIM = C_IN * PATCH * PATCH  # flattened patch dim
D = 32                       # embed dim
N_HEADS = 2
HEAD_DIM = D // N_HEADS
D_MLP = 4 * D
D_C = 64                     # AdaLN conditioning dim
RANK = 4                     # LoRA rank
LORA_SCALE = 1.0
ADALN_SCALE = 1.0
DEPTH = 2                    # number of transformer blocks
EPS = 1e-6                   # DINOv2 LayerNorm eps
NT = B * N_TOK               # stacked token rows


# ----------------------------- in-kernel math --------------------------------
def _erf(x):
    # Abramowitz & Stegun 7.1.26 erf (|err| < 1.5e-7): exact-GELU semantics to
    # f32 precision without relying on an erf primitive inside Mosaic.
    a1, a2, a3, a4, a5 = 0.254829592, -0.284496736, 1.421413741, -1.453152027, 1.061405429
    p = 0.3275911
    sign = jnp.where(x >= 0, 1.0, -1.0)
    ax = jnp.abs(x)
    t = 1.0 / (1.0 + p * ax)
    poly = ((((a5 * t + a4) * t + a3) * t + a2) * t + a1) * t
    return sign * (1.0 - poly * jnp.exp(-ax * ax))


def _gelu_exact(x):
    return 0.5 * x * (1.0 + _erf(x * (1.0 / math.sqrt(2.0))))


def _layernorm(x, w, b):
    mu = jnp.mean(x, axis=-1, keepdims=True)
    var = jnp.mean((x - mu) ** 2, axis=-1, keepdims=True)
    return (x - mu) * jax.lax.rsqrt(var + EPS) * w + b


# ----------------------------- fused Pallas kernel ---------------------------
def fused_vit_kernel(
    patches_ref,    # (NT, PDIM)   stacked (CLS row is zeros; bias carries CLS)
    c_ref,          # (B, D_C)
    patch_w_ref,    # (PDIM, D)
    tok_bias_ref,   # (NT, D)      cls/pos/patch bias, tiled over batch
    w_ada_ref,      # (DEPTH, D_C, 6*D)
    w_qkv_ref,      # (DEPTH, D, 3*D)   attention scale folded into q columns
    b_qkv_ref,      # (DEPTH, 1, 3*D)
    w_proj_ref,     # (DEPTH, D, D)
    w_fc1_ref,      # (DEPTH, D, D_MLP)
    b_fc1_ref,      # (DEPTH, 1, D_MLP)
    w_fc2_ref,      # (DEPTH, D_MLP, D)
    vec_ref,        # (DEPTH, 8, D): [n1w, n1b, n2w, n2b, bproj, ls1, bfc2, ls2]
    norm_ref,       # (2, D): [norm_w, norm_b]
    out_ref,        # (NT, D)
):
    # ---- patch embed + CLS + pos (one matmul over all B*N_TOK rows) ----
    x = (jnp.dot(patches_ref[...], patch_w_ref[...],
                 preferred_element_type=jnp.float32) + tok_bias_ref[...])   # (NT, D)
    c = c_ref[...]                                                           # (B, D_C)

    def expand(m):  # (B, D) -> (NT, D): broadcast each batch row over its tokens
        return jnp.concatenate(
            [jnp.broadcast_to(m[b:b + 1, :], (N_TOK, D)) for b in range(B)], axis=0)

    for d in range(DEPTH):           # static unroll over depth (weights resident)
        vec = vec_ref[d]             # (8, D)
        n1w, n1b = vec[0:1], vec[1:2]
        n2w, n2b = vec[2:3], vec[3:4]
        bproj, ls1 = vec[4:5], vec[5:6]
        bfc2, ls2 = vec[6:7], vec[7:8]

        # ---- AdaLN modulation: ONE (B, D_C) x (D_C, 6D) matmul, lane slices ----
        mod = jnp.tanh(jnp.dot(c, w_ada_ref[d],
                               preferred_element_type=jnp.float32)) * ADALN_SCALE
        shift_msa = expand(mod[:, 0 * D:1 * D])
        scale_msa = expand(mod[:, 1 * D:2 * D] + 1.0)
        gate_msa = expand(mod[:, 2 * D:3 * D] + 1.0)
        shift_mlp = expand(mod[:, 3 * D:4 * D])
        scale_mlp = expand(mod[:, 4 * D:5 * D] + 1.0)
        gate_mlp = expand(mod[:, 5 * D:6 * D] + 1.0)

        # ---- attention residual branch (LoRA folded, scale folded into q) ----
        h = _layernorm(x, n1w, n1b) * scale_msa + shift_msa
        qkv = jnp.dot(h, w_qkv_ref[d],
                      preferred_element_type=jnp.float32) + b_qkv_ref[d]     # (NT, 3D)

        batch_outs = []
        for b in range(B):                              # static unroll
            qkv_b = qkv[b * N_TOK:(b + 1) * N_TOK, :]   # (N_TOK, 3D)
            head_outs = []
            for hh in range(N_HEADS):                   # static unroll
                lo = hh * HEAD_DIM
                q_bh = qkv_b[:, lo:lo + HEAD_DIM]                    # pre-scaled
                k_bh = qkv_b[:, D + lo:D + lo + HEAD_DIM]
                v_bh = qkv_b[:, 2 * D + lo:2 * D + lo + HEAD_DIM]
                # scores: contract last dims (transpose absorbed by dot_general)
                s = jax.lax.dot_general(q_bh, k_bh,
                                        dimension_numbers=(((1,), (1,)), ((), ())),
                                        preferred_element_type=jnp.float32)  # (N, N)
                s = s - jnp.max(s, axis=-1, keepdims=True)
                p = jnp.exp(s)
                p = p * pl.reciprocal(jnp.sum(p, axis=-1, keepdims=True), approx=True)
                head_outs.append(jnp.dot(p, v_bh,
                                         preferred_element_type=jnp.float32))
            batch_outs.append(jnp.concatenate(head_outs, axis=-1))  # (N_TOK, D)
        attn = jnp.concatenate(batch_outs, axis=0)                  # (NT, D)
        attn = jnp.dot(attn, w_proj_ref[d],
                       preferred_element_type=jnp.float32) + bproj
        x = x + attn * ls1 * gate_msa

        # ---- MLP residual branch ----
        h = _layernorm(x, n2w, n2b) * scale_mlp + shift_mlp
        h = jnp.dot(h, w_fc1_ref[d], preferred_element_type=jnp.float32) + b_fc1_ref[d]
        h = _gelu_exact(h)
        h = jnp.dot(h, w_fc2_ref[d], preferred_element_type=jnp.float32) + bfc2
        x = x + h * ls2 * gate_mlp

    # ---- final LayerNorm (wrapper slices the CLS token per batch) ----
    norm = norm_ref[...]
    out_ref[...] = _layernorm(x, norm[0:1], norm[1:2])


# ----------------------------- wrapper ---------------------------------------
WEIGHT_ORDER = [
    "patch_w", "tok_bias", "w_ada",
    "w_qkv", "b_qkv", "w_proj",
    "w_fc1", "b_fc1", "w_fc2",
    "vec", "norm",
]


def adaln_lora_dinov2_forward(x_img, packed, c=None):
    """Equivalent of AdaLNLoRADiNOv2ViT.forward(x): vision_model(x) -> CLS."""
    # Conv2d(patch, stride=patch) == extract non-overlapping patches + matmul.
    patches = x_img.reshape(B, C_IN, GRID_HW, PATCH, GRID_HW, PATCH)
    patches = patches.transpose(0, 2, 4, 1, 3, 5).reshape(B, N_PATCH, PDIM)
    # Prepend a zero "patch" row per batch for the CLS token; its embedding
    # comes purely from tok_bias (cls_token + pos_embed[0]).
    patches = jnp.concatenate(
        [jnp.zeros((B, 1, PDIM), jnp.float32), patches], axis=1)
    patches = patches.reshape(NT, PDIM)                 # stacked token rows
    if c is None:
        # AdaLNDiNOBlock: c defaults to zeros (forward() calls blocks without c)
        c = jnp.zeros((B, D_C), jnp.float32)

    weights = [packed[k] for k in WEIGHT_ORDER]
    args = [patches, c] + weights

    def _full_spec(arr):
        nd = arr.ndim
        return pl.BlockSpec(arr.shape, lambda i, _nd=nd: (0,) * _nd)

    out = pl.pallas_call(
        fused_vit_kernel,
        out_shape=jax.ShapeDtypeStruct((NT, D), jnp.float32),
        grid=(1,),                                     # whole batch in one step
        in_specs=[_full_spec(a) for a in args],
        out_specs=pl.BlockSpec((NT, D), lambda i: (0, 0)),
        compiler_params=pltpu.CompilerParams(dimension_semantics=("arbitrary",)),
    )(*args)
    # DinoVisionTransformer.head == Identity on the CLS token
    return out.reshape(B, N_TOK, D)[:, 0, :]


# ----------------------------- parameters ------------------------------------
def init_params(key):
    ks = iter(jax.random.split(key, 256))

    def nrm(shape, std=0.02):
        return std * jax.random.normal(next(ks), shape, jnp.float32)

    params = {
        "patch_w": nrm((PDIM, D)),   # conv weight, flattened (c,u,v) x D
        "patch_b": nrm((1, D)),
        "cls_token": nrm((1, 1, D)),
        "pos_embed": nrm((1, N_TOK, D)),
        "norm_w": 1.0 + nrm((1, D)),
        "norm_b": nrm((1, D)),
        "blocks": [],
    }
    for _ in range(DEPTH):
        # NOTE: PyTorch __init__ zero-inits the adaLN weight and LoRA `up`
        # weights; they are random here so the synthetic kernel exercises those
        # code paths (the math is identical).
        blk = {
            "w_ada": nrm((D_C, 6 * D)),
            "n1_w": 1.0 + nrm((1, D)), "n1_b": nrm((1, D)),
            "w_qkv": nrm((D, 3 * D)), "b_qkv": nrm((1, 3 * D)),
            "w_qkv_down": nrm((D, RANK), 1.0 / RANK), "w_qkv_up": nrm((RANK, 3 * D)),
            "w_proj": nrm((D, D)), "b_proj": nrm((1, D)),
            "w_proj_down": nrm((D, RANK), 1.0 / RANK), "w_proj_up": nrm((RANK, D)),
            "ls1": 0.1 + nrm((1, D), 0.01),
            "n2_w": 1.0 + nrm((1, D)), "n2_b": nrm((1, D)),
            "w_fc1": nrm((D, D_MLP)), "b_fc1": nrm((1, D_MLP)),
            "w_fc1_down": nrm((D, RANK), 1.0 / RANK), "w_fc1_up": nrm((RANK, D_MLP)),
            "w_fc2": nrm((D_MLP, D)), "b_fc2": nrm((1, D)),
            "w_fc2_down": nrm((D_MLP, RANK), 1.0 / RANK), "w_fc2_up": nrm((RANK, D)),
            "ls2": 0.1 + nrm((1, D), 0.01),
        }
        params["blocks"].append(blk)
    return params


def pack_params(params):
    """Eval-mode weight prep: fold LoRA into base weights, fold the attention
    scale into the q columns of the fused qkv weight/bias, stack per-block
    weights along a leading depth axis, and pack all small (1, D) vectors into
    one (DEPTH, 8, D) slab (plus a (2, D) final-norm slab) to minimize DMAs."""
    scale = HEAD_DIM ** -0.5
    tok_bias = jnp.concatenate(
        [params["cls_token"].reshape(1, D) + params["pos_embed"][0, 0:1, :],
         params["patch_b"] + params["pos_embed"][0, 1:, :]], axis=0)     # (N_TOK, D)
    tok_bias = jnp.tile(tok_bias, (B, 1))                                # (NT, D)

    qkv_scale = jnp.concatenate(
        [jnp.full((1, D), scale, jnp.float32),
         jnp.ones((1, 2 * D), jnp.float32)], axis=1)                     # scale q only

    acc = {k: [] for k in ["w_ada", "w_qkv", "b_qkv", "w_proj",
                           "w_fc1", "b_fc1", "w_fc2", "vec"]}
    for p in params["blocks"]:
        w_qkv = (p["w_qkv"] + LORA_SCALE * (p["w_qkv_down"] @ p["w_qkv_up"])) * qkv_scale
        b_qkv = p["b_qkv"] * qkv_scale
        w_pr = p["w_proj"] + LORA_SCALE * (p["w_proj_down"] @ p["w_proj_up"])
        w_f1 = p["w_fc1"] + LORA_SCALE * (p["w_fc1_down"] @ p["w_fc1_up"])
        w_f2 = p["w_fc2"] + LORA_SCALE * (p["w_fc2_down"] @ p["w_fc2_up"])

        acc["w_ada"].append(p["w_ada"][None])
        acc["w_qkv"].append(w_qkv[None])
        acc["b_qkv"].append(b_qkv[None])
        acc["w_proj"].append(w_pr[None])
        acc["w_fc1"].append(w_f1[None])
        acc["b_fc1"].append(p["b_fc1"][None])
        acc["w_fc2"].append(w_f2[None])
        acc["vec"].append(jnp.concatenate(
            [p["n1_w"], p["n1_b"], p["n2_w"], p["n2_b"],
             p["b_proj"], p["ls1"], p["b_fc2"], p["ls2"]], axis=0)[None])  # (1, 8, D)

    packed = {k: jnp.concatenate(v, axis=0) for k, v in acc.items()}
    packed.update(
        patch_w=params["patch_w"],
        tok_bias=tok_bias,
        norm=jnp.concatenate([params["norm_w"], params["norm_b"]], axis=0),  # (2, D)
    )
    return packed


# ----------------------------- pure-JAX reference -----------------------------
def ref_forward(x_img, params, c=None):
    patches = x_img.reshape(B, C_IN, GRID_HW, PATCH, GRID_HW, PATCH)
    patches = patches.transpose(0, 2, 4, 1, 3, 5).reshape(B, N_PATCH, -1)
    tok = patches @ params["patch_w"] + params["patch_b"]
    cls = jnp.broadcast_to(params["cls_token"], (B, 1, D))
    tok = jnp.concatenate([cls, tok], axis=1) + params["pos_embed"]
    if c is None:
        c = jnp.zeros((B, D_C), jnp.float32)

    def ln(x, w, b):
        mu = x.mean(-1, keepdims=True)
        var = ((x - mu) ** 2).mean(-1, keepdims=True)
        return (x - mu) / jnp.sqrt(var + EPS) * w + b

    def lora(x, w, b, wd, wu):
        return x @ w + b + LORA_SCALE * ((x @ wd) @ wu)

    for p in params["blocks"]:
        mod = jnp.tanh(c @ p["w_ada"]) * ADALN_SCALE
        sm, scm, gm, sp, scp, gp = jnp.split(mod, 6, axis=1)
        scm, gm, scp, gp = scm + 1, gm + 1, scp + 1, gp + 1
        h = ln(tok, p["n1_w"], p["n1_b"]) * scm[:, None, :] + sm[:, None, :]
        qkv = lora(h, p["w_qkv"], p["b_qkv"], p["w_qkv_down"], p["w_qkv_up"])
        q, k, v = jnp.split(qkv, 3, axis=-1)
        q = q.reshape(B, N_TOK, N_HEADS, HEAD_DIM).transpose(0, 2, 1, 3) * (HEAD_DIM ** -0.5)
        k = k.reshape(B, N_TOK, N_HEADS, HEAD_DIM).transpose(0, 2, 1, 3)
        v = v.reshape(B, N_TOK, N_HEADS, HEAD_DIM).transpose(0, 2, 1, 3)
        a = jax.nn.softmax(q @ k.transpose(0, 1, 3, 2), axis=-1)
        o = (a @ v).transpose(0, 2, 1, 3).reshape(B, N_TOK, D)
        o = lora(o, p["w_proj"], p["b_proj"], p["w_proj_down"], p["w_proj_up"])
        tok = tok + o * p["ls1"] * gm[:, None, :]
        h = ln(tok, p["n2_w"], p["n2_b"]) * scp[:, None, :] + sp[:, None, :]
        h = lora(h, p["w_fc1"], p["b_fc1"], p["w_fc1_down"], p["w_fc1_up"])
        h = 0.5 * h * (1.0 + jax.lax.erf(h / jnp.sqrt(2.0)))   # exact GELU
        h = lora(h, p["w_fc2"], p["b_fc2"], p["w_fc2_down"], p["w_fc2_up"])
        tok = tok + h * p["ls2"] * gp[:, None, :]
    tok = ln(tok, params["norm_w"], params["norm_b"])
    return tok[:, 0, :]


# ----------------------------- main -------------------------------------------
if __name__ == "__main__":
    key = jax.random.PRNGKey(0)
    kx, kp = jax.random.split(key)
    # PyTorch-style NCHW input
    x_img = jax.random.normal(kx, (B, C_IN, IMG, IMG), jnp.float32)
    params = init_params(kp)
    packed = pack_params(params)

    fwd = jax.jit(adaln_lora_dinov2_forward)
    out = jax.block_until_ready(fwd(x_img, packed))
    assert out.shape == (B, D)

    ref = ref_forward(x_img, params)
    np.testing.assert_allclose(np.asarray(out), np.asarray(ref),
                               rtol=2e-3, atol=2e-3)
    # TODO(synk): torch.hub pretrained DINOv2 weights are replaced by
    # deterministic synthetic initialization (no checkpoint loading here).
    print("KERNEL_OK")
</pallas_src>

<mosaic_0001>
module attributes {stable_mosaic.version = 11 : i64} {
  func.func @fused_vit_kernel(%arg0: i32, %arg1: memref<10x192xf32, #tpu.memory_space<vmem>>, %arg2: memref<2x64xf32, #tpu.memory_space<vmem>>, %arg3: memref<192x32xf32, #tpu.memory_space<vmem>>, %arg4: memref<10x32xf32, #tpu.memory_space<vmem>>, %arg5: memref<2x64x192xf32, #tpu.memory_space<vmem>>, %arg6: memref<2x32x96xf32, #tpu.memory_space<vmem>>, %arg7: memref<2x1x96xf32, #tpu.memory_space<vmem>>, %arg8: memref<2x32x32xf32, #tpu.memory_space<vmem>>, %arg9: memref<2x32x128xf32, #tpu.memory_space<vmem>>, %arg10: memref<2x1x128xf32, #tpu.memory_space<vmem>>, %arg11: memref<2x128x32xf32, #tpu.memory_space<vmem>>, %arg12: memref<2x8x32xf32, #tpu.memory_space<vmem>>, %arg13: memref<2x32xf32, #tpu.memory_space<vmem>>, %arg14: memref<10x32xf32, #tpu.memory_space<vmem>>) attributes {dimension_semantics = [#tpu.dimension_semantics<arbitrary>], iteration_bounds = array<i64: 1>, scalar_prefetch = 0 : i64, scratch_operands = 0 : i64, tpu.core_type = #tpu.core_type<tc>, window_params = [{pipeline_mode = #tpu.pipeline_mode<synchronous>, transform_indices = @transform_0, window_bounds = array<i64: 10, 192>}, {pipeline_mode = #tpu.pipeline_mode<synchronous>, transform_indices = @transform_1, window_bounds = array<i64: 2, 64>}, {pipeline_mode = #tpu.pipeline_mode<synchronous>, transform_indices = @transform_2, window_bounds = array<i64: 192, 32>}, {pipeline_mode = #tpu.pipeline_mode<synchronous>, transform_indices = @transform_3, window_bounds = array<i64: 10, 32>}, {pipeline_mode = #tpu.pipeline_mode<synchronous>, transform_indices = @transform_4, window_bounds = array<i64: 2, 64, 192>}, {pipeline_mode = #tpu.pipeline_mode<synchronous>, transform_indices = @transform_5, window_bounds = array<i64: 2, 32, 96>}, {pipeline_mode = #tpu.pipeline_mode<synchronous>, transform_indices = @transform_6, window_bounds = array<i64: 2, 1, 96>}, {pipeline_mode = #tpu.pipeline_mode<synchronous>, transform_indices = @transform_7, window_bounds = array<i64: 2, 32, 32>}, {pipeline_mode = #tpu.pipeline_mode<synchronous>, transform_indices = @transform_8, window_bounds = array<i64: 2, 32, 128>}, {pipeline_mode = #tpu.pipeline_mode<synchronous>, transform_indices = @transform_9, window_bounds = array<i64: 2, 1, 128>}, {pipeline_mode = #tpu.pipeline_mode<synchronous>, transform_indices = @transform_10, window_bounds = array<i64: 2, 128, 32>}, {pipeline_mode = #tpu.pipeline_mode<synchronous>, transform_indices = @transform_11, window_bounds = array<i64: 2, 8, 32>}, {pipeline_mode = #tpu.pipeline_mode<synchronous>, transform_indices = @transform_12, window_bounds = array<i64: 2, 32>}, {pipeline_mode = #tpu.pipeline_mode<synchronous>, transform_indices = @transform_13, window_bounds = array<i64: 10, 32>}]} {
    %c0 = arith.constant 0 : index
    %c0_0 = arith.constant 0 : index
    %0 = vector.load %arg1[%c0, %c0_0] : memref<10x192xf32, #tpu.memory_space<vmem>>, vector<10x192xf32>
    %c0_1 = arith.constant 0 : index
    %c0_2 = arith.constant 0 : index
    %1 = vector.load %arg3[%c0_1, %c0_2] : memref<192x32xf32, #tpu.memory_space<vmem>>, vector<192x32xf32>
    %cst = arith.constant dense<0.000000e+00> : vector<10x32xf32>
    %2 = tpu.matmul %0, %1, %cst {dimension_numbers = #tpu.dot_dimension_numbers<[1], [0], [0], [1], [0, 0, 1, 1], [], []>} : vector<10x192xf32>, vector<192x32xf32>, vector<10x32xf32> -> vector<10x32xf32>
    %c0_3 = arith.constant 0 : index
    %c0_4 = arith.constant 0 : index
    %3 = vector.load %arg4[%c0_3, %c0_4] : memref<10x32xf32, #tpu.memory_space<vmem>>, vector<10x32xf32>
    %4 = arith.addf %2, %3 : vector<10x32xf32>
    %c0_5 = arith.constant 0 : index
    %c0_6 = arith.constant 0 : index
    %5 = vector.load %arg2[%c0_5, %c0_6] : memref<2x64xf32, #tpu.memory_space<vmem>>, vector<2x64xf32>
    %c0_7 = arith.constant 0 : index
    %c0_8 = arith.constant 0 : index
    %c0_9 = arith.constant 0 : index
    %6 = vector.load %arg12[%c0_7, %c0_8, %c0_9] : memref<2x8x32xf32, #tpu.memory_space<vmem>>, vector<1x8x32xf32>
    %7 = vector.shape_cast %6 : vector<1x8x32xf32> to vector<8x32xf32>
    %8 = vector.extract_strided_slice %7 {offsets = [0, 0], sizes = [1, 32], strides = [1, 1]} : vector<8x32xf32> to vector<1x32xf32>
    %9 = vector.extract_strided_slice %7 {offsets = [1, 0], sizes = [1, 32], strides = [1, 1]} : vector<8x32xf32> to vector<1x32xf32>
    %10 = vector.extract_strided_slice %7 {offsets = [2, 0], sizes = [1, 32], strides = [1, 1]} : vector<8x32xf32> to vector<1x32xf32>
    %11 = vector.extract_strided_slice %7 {offsets = [3, 0], sizes = [1, 32], strides = [1, 1]} : vector<8x32xf32> to vector<1x32xf32>
    %12 = vector.extract_strided_slice %7 {offsets = [4, 0], sizes = [1, 32], strides = [1, 1]} : vector<8x32xf32> to vector<1x32xf32>
    %13 = vector.extract_strided_slice %7 {offsets = [5, 0], sizes = [1, 32], strides = [1, 1]} : vector<8x32xf32> to vector<1x32xf32>
    %14 = vector.extract_strided_slice %7 {offsets = [6, 0], sizes = [1, 32], strides = [1, 1]} : vector<8x32xf32> to vector<1x32xf32>
    %15 = vector.extract_strided_slice %7 {offsets = [7, 0], sizes = [1, 32], strides = [1, 1]} : vector<8x32xf32> to vector<1x32xf32>
    %c0_10 = arith.constant 0 : index
    %c0_11 = arith.constant 0 : index
    %c0_12 = arith.constant 0 : index
    %16 = vector.load %arg5[%c0_10, %c0_11, %c0_12] : memref<2x64x192xf32, #tpu.memory_space<vmem>>, vector<1x64x192xf32>
    %17 = vector.shape_cast %16 : vector<1x64x192xf32> to vector<64x192xf32>
    %cst_13 = arith.constant dense<0.000000e+00> : vector<2x192xf32>
    %18 = tpu.matmul %5, %17, %cst_13 {dimension_numbers = #tpu.dot_dimension_numbers<[1], [0], [0], [1], [0, 0, 1, 1], [], []>} : vector<2x64xf32>, vector<64x192xf32>, vector<2x192xf32> -> vector<2x192xf32>
    %19 = math.tanh %18 : vector<2x192xf32>
    %cst_14 = arith.constant 1.000000e+00 : f32
    %20 = vector.broadcast %cst_14 : f32 to vector<2x192xf32>
    %21 = arith.mulf %19, %20 : vector<2x192xf32>
    %22 = vector.extract_strided_slice %21 {offsets = [0, 0], sizes = [2, 32], strides = [1, 1]} : vector<2x192xf32> to vector<2x32xf32>
    %23 = vector.extract_strided_slice %22 {offsets = [0, 0], sizes = [1, 32], strides = [1, 1]} : vector<2x32xf32> to vector<1x32xf32>
    %24 = vector.shape_cast %23 : vector<1x32xf32> to vector<1x32xf32>
    %25 = vector.broadcast %24 : vector<1x32xf32> to vector<5x32xf32>
    %26 = vector.extract_strided_slice %22 {offsets = [1, 0], sizes = [1, 32], strides = [1, 1]} : vector<2x32xf32> to vector<1x32xf32>
    %27 = vector.shape_cast %26 : vector<1x32xf32> to vector<1x32xf32>
    %28 = vector.broadcast %27 : vector<1x32xf32> to vector<5x32xf32>
    %29 = tpu.concatenate %25, %28 in 0 : vector<5x32xf32>, vector<5x32xf32> -> vector<10x32xf32>
    %30 = vector.extract_strided_slice %21 {offsets = [0, 32], sizes = [2, 32], strides = [1, 1]} : vector<2x192xf32> to vector<2x32xf32>
    %cst_15 = arith.constant 1.000000e+00 : f32
    %31 = vector.broadcast %cst_15 : f32 to vector<2x32xf32>
    %32 = arith.addf %30, %31 : vector<2x32xf32>
    %33 = vector.extract_strided_slice %32 {offsets = [0, 0], sizes = [1, 32], strides = [1, 1]} : vector<2x32xf32> to vector<1x32xf32>
    %34 = vector.shape_cast %33 : vector<1x32xf32> to vector<1x32xf32>
    %35 = vector.broadcast %34 : vector<1x32xf32> to vector<5x32xf32>
    %36 = vector.extract_strided_slice %32 {offsets = [1, 0], sizes = [1, 32], strides = [1, 1]} : vector<2x32xf32> to vector<1x32xf32>
    %37 = vector.shape_cast %36 : vector<1x32xf32> to vector<1x32xf32>
    %38 = vector.broadcast %37 : vector<1x32xf32> to vector<5x32xf32>
    %39 = tpu.concatenate %35, %38 in 0 : vector<5x32xf32>, vector<5x32xf32> -> vector<10x32xf32>
    %40 = vector.extract_strided_slice %21 {offsets = [0, 64], sizes = [2, 32], strides = [1, 1]} : vector<2x192xf32> to vector<2x32xf32>
    %cst_16 = arith.constant 1.000000e+00 : f32
    %41 = vector.broadcast %cst_16 : f32 to vector<2x32xf32>
    %42 = arith.addf %40, %41 : vector<2x32xf32>
    %43 = vector.extract_strided_slice %42 {offsets = [0, 0], sizes = [1, 32], strides = [1, 1]} : vector<2x32xf32> to vector<1x32xf32>
    %44 = vector.shape_cast %43 : vector<1x32xf32> to vector<1x32xf32>
    %45 = vector.broadcast %44 : vector<1x32xf32> to vector<5x32xf32>
    %46 = vector.extract_strided_slice %42 {offsets = [1, 0], sizes = [1, 32], strides = [1, 1]} : vector<2x32xf32> to vector<1x32xf32>
    %47 = vector.shape_cast %46 : vector<1x32xf32> to vector<1x32xf32>
    %48 = vector.broadcast %47 : vector<1x32xf32> to vector<5x32xf32>
    %49 = tpu.concatenate %45, %48 in 0 : vector<5x32xf32>, vector<5x32xf32> -> vector<10x32xf32>
    %50 = vector.extract_strided_slice %21 {offsets = [0, 96], sizes = [2, 32], strides = [1, 1]} : vector<2x192xf32> to vector<2x32xf32>
    %51 = vector.extract_strided_slice %50 {offsets = [0, 0], sizes = [1, 32], strides = [1, 1]} : vector<2x32xf32> to vector<1x32xf32>
    %52 = vector.shape_cast %51 : vector<1x32xf32> to vector<1x32xf32>
    %53 = vector.broadcast %52 : vector<1x32xf32> to vector<5x32xf32>
    %54 = vector.extract_strided_slice %50 {offsets = [1, 0], sizes = [1, 32], strides = [1, 1]} : vector<2x32xf32> to vector<1x32xf32>
    %55 = vector.shape_cast %54 : vector<1x32xf32> to vector<1x32xf32>
    %56 = vector.broadcast %55 : vector<1x32xf32> to vector<5x32xf32>
    %57 = tpu.concatenate %53, %56 in 0 : vector<5x32xf32>, vector<5x32xf32> -> vector<10x32xf32>
    %58 = vector.extract_strided_slice %21 {offsets = [0, 128], sizes = [2, 32], strides = [1, 1]} : vector<2x192xf32> to vector<2x32xf32>
    %cst_17 = arith.constant 1.000000e+00 : f32
    %59 = vector.broadcast %cst_17 : f32 to vector<2x32xf32>
    %60 = arith.addf %58, %59 : vector<2x32xf32>
    %61 = vector.extract_strided_slice %60 {offsets = [0, 0], sizes = [1, 32], strides = [1, 1]} : vector<2x32xf32> to vector<1x32xf32>
    %62 = vector.shape_cast %61 : vector<1x32xf32> to vector<1x32xf32>
    %63 = vector.broadcast %62 : vector<1x32xf32> to vector<5x32xf32>
    %64 = vector.extract_strided_slice %60 {offsets = [1, 0], sizes = [1, 32], strides = [1, 1]} : vector<2x32xf32> to vector<1x32xf32>
    %65 = vector.shape_cast %64 : vector<1x32xf32> to vector<1x32xf32>
    %66 = vector.broadcast %65 : vector<1x32xf32> to vector<5x32xf32>
    %67 = tpu.concatenate %63, %66 in 0 : vector<5x32xf32>, vector<5x32xf32> -> vector<10x32xf32>
    %68 = vector.extract_strided_slice %21 {offsets = [0, 160], sizes = [2, 32], strides = [1, 1]} : vector<2x192xf32> to vector<2x32xf32>
    %cst_18 = arith.constant 1.000000e+00 : f32
    %69 = vector.broadcast %cst_18 : f32 to vector<2x32xf32>
    %70 = arith.addf %68, %69 : vector<2x32xf32>
    %71 = vector.extract_strided_slice %70 {offsets = [0, 0], sizes = [1, 32], strides = [1, 1]} : vector<2x32xf32> to vector<1x32xf32>
    %72 = vector.shape_cast %71 : vector<1x32xf32> to vector<1x32xf32>
    %73 = vector.broadcast %72 : vector<1x32xf32> to vector<5x32xf32>
    %74 = vector.extract_strided_slice %70 {offsets = [1, 0], sizes = [1, 32], strides = [1, 1]} : vector<2x32xf32> to vector<1x32xf32>
    %75 = vector.shape_cast %74 : vector<1x32xf32> to vector<1x32xf32>
    %76 = vector.broadcast %75 : vector<1x32xf32> to vector<5x32xf32>
    %77 = tpu.concatenate %73, %76 in 0 : vector<5x32xf32>, vector<5x32xf32> -> vector<10x32xf32>
    %cst_19 = arith.constant dense<0.000000e+00> : vector<10xf32>
    %78 = vector.multi_reduction <add>, %4, %cst_19 [1] : vector<10x32xf32> to vector<10xf32>
    %79 = vector.shape_cast %78 : vector<10xf32> to vector<10x1xf32>
    %cst_20 = arith.constant 3.200000e+01 : f32
    %80 = vector.broadcast %cst_20 : f32 to vector<10x1xf32>
    %81 = arith.divf %79, %80 : vector<10x1xf32>
    %82 = vector.broadcast %81 : vector<10x1xf32> to vector<10x32xf32>
    %83 = arith.subf %4, %82 : vector<10x32xf32>
    %84 = arith.mulf %83, %83 : vector<10x32xf32>
    %cst_21 = arith.constant dense<0.000000e+00> : vector<10xf32>
    %85 = vector.multi_reduction <add>, %84, %cst_21 [1] : vector<10x32xf32> to vector<10xf32>
    %86 = vector.shape_cast %85 : vector<10xf32> to vector<10x1xf32>
    %cst_22 = arith.constant 3.200000e+01 : f32
    %87 = vector.broadcast %cst_22 : f32 to vector<10x1xf32>
    %88 = arith.divf %86, %87 : vector<10x1xf32>
    %89 = vector.broadcast %81 : vector<10x1xf32> to vector<10x32xf32>
    %90 = arith.subf %4, %89 : vector<10x32xf32>
    %cst_23 = arith.constant 9.99999997E-7 : f32
    %91 = vector.broadcast %cst_23 : f32 to vector<10x1xf32>
    %92 = arith.addf %88, %91 : vector<10x1xf32>
    %93 = math.rsqrt %92 : vector<10x1xf32>
    %94 = vector.broadcast %93 : vector<10x1xf32> to vector<10x32xf32>
    %95 = arith.mulf %90, %94 : vector<10x32xf32>
    %96 = vector.broadcast %8 : vector<1x32xf32> to vector<10x32xf32>
    %97 = arith.mulf %95, %96 : vector<10x32xf32>
    %98 = vector.broadcast %9 : vector<1x32xf32> to vector<10x32xf32>
    %99 = arith.addf %97, %98 : vector<10x32xf32>
    %100 = arith.mulf %99, %39 : vector<10x32xf32>
    %101 = arith.addf %100, %29 : vector<10x32xf32>
    %c0_24 = arith.constant 0 : index
    %c0_25 = arith.constant 0 : index
    %c0_26 = arith.constant 0 : index
    %102 = vector.load %arg6[%c0_24, %c0_25, %c0_26] : memref<2x32x96xf32, #tpu.memory_space<vmem>>, vector<1x32x96xf32>
    %103 = vector.shape_cast %102 : vector<1x32x96xf32> to vector<32x96xf32>
    %cst_27 = arith.constant dense<0.000000e+00> : vector<10x96xf32>
    %104 = tpu.matmul %101, %103, %cst_27 {dimension_numbers = #tpu.dot_dimension_numbers<[1], [0], [0], [1], [0, 0, 1, 1], [], []>} : vector<10x32xf32>, vector<32x96xf32>, vector<10x96xf32> -> vector<10x96xf32>
    %c0_28 = arith.constant 0 : index
    %c0_29 = arith.constant 0 : index
    %c0_30 = arith.constant 0 : index
    %105 = vector.load %arg7[%c0_28, %c0_29, %c0_30] : memref<2x1x96xf32, #tpu.memory_space<vmem>>, vector<1x1x96xf32>
    %106 = vector.shape_cast %105 : vector<1x1x96xf32> to vector<1x96xf32>
    %107 = vector.broadcast %106 : vector<1x96xf32> to vector<10x96xf32>
    %108 = arith.addf %104, %107 : vector<10x96xf32>
    %109 = vector.extract_strided_slice %108 {offsets = [0, 0], sizes = [5, 96], strides = [1, 1]} : vector<10x96xf32> to vector<5x96xf32>
    %110 = vector.extract_strided_slice %109 {offsets = [0, 0], sizes = [5, 16], strides = [1, 1]} : vector<5x96xf32> to vector<5x16xf32>
    %111 = vector.extract_strided_slice %109 {offsets = [0, 32], sizes = [5, 16], strides = [1, 1]} : vector<5x96xf32> to vector<5x16xf32>
    %112 = vector.extract_strided_slice %109 {offsets = [0, 64], sizes = [5, 16], strides = [1, 1]} : vector<5x96xf32> to vector<5x16xf32>
    %cst_31 = arith.constant dense<0.000000e+00> : vector<5x5xf32>
    %113 = tpu.matmul %110, %111, %cst_31 {dimension_numbers = #tpu.dot_dimension_numbers<[1], [1], [0], [0], [0, 0, 1, 0], [], []>} : vector<5x16xf32>, vector<5x16xf32>, vector<5x5xf32> -> vector<5x5xf32>
    %cst_32 = arith.constant dense<0xFF800000> : vector<5xf32>
    %114 = vector.multi_reduction <maximumf>, %113, %cst_32 [1] : vector<5x5xf32> to vector<5xf32>
    %115 = vector.shape_cast %114 : vector<5xf32> to vector<5x1xf32>
    %116 = vector.broadcast %115 : vector<5x1xf32> to vector<5x5xf32>
    %117 = arith.subf %113, %116 : vector<5x5xf32>
    %118 = math.exp %117 : vector<5x5xf32>
    %cst_33 = arith.constant dense<0.000000e+00> : vector<5xf32>
    %119 = vector.multi_reduction <add>, %118, %cst_33 [1] : vector<5x5xf32> to vector<5xf32>
    %120 = vector.shape_cast %119 : vector<5xf32> to vector<5x1xf32>
    %121 = tpu.reciprocal %120 {approx = true} : vector<5x1xf32> -> vector<5x1xf32>
    %122 = vector.broadcast %121 : vector<5x1xf32> to vector<5x5xf32>
    %123 = arith.mulf %118, %122 : vector<5x5xf32>
    %cst_34 = arith.constant dense<0.000000e+00> : vector<5x16xf32>
    %124 = tpu.matmul %123, %112, %cst_34 {dimension_numbers = #tpu.dot_dimension_numbers<[1], [0], [0], [1], [0, 0, 1, 1], [], []>} : vector<5x5xf32>, vector<5x16xf32>, vector<5x16xf32> -> vector<5x16xf32>
    %125 = vector.extract_strided_slice %109 {offsets = [0, 16], sizes = [5, 16], strides = [1, 1]} : vector<5x96xf32> to vector<5x16xf32>
    %126 = vector.extract_strided_slice %109 {offsets = [0, 48], sizes = [5, 16], strides = [1, 1]} : vector<5x96xf32> to vector<5x16xf32>
    %127 = vector.extract_strided_slice %109 {offsets = [0, 80], sizes = [5, 16], strides = [1, 1]} : vector<5x96xf32> to vector<5x16xf32>
    %cst_35 = arith.constant dense<0.000000e+00> : vector<5x5xf32>
    %128 = tpu.matmul %125, %126, %cst_35 {dimension_numbers = #tpu.dot_dimension_numbers<[1], [1], [0], [0], [0, 0, 1, 0], [], []>} : vector<5x16xf32>, vector<5x16xf32>, vector<5x5xf32> -> vector<5x5xf32>
    %cst_36 = arith.constant dense<0xFF800000> : vector<5xf32>
    %129 = vector.multi_reduction <maximumf>, %128, %cst_36 [1] : vector<5x5xf32> to vector<5xf32>
    %130 = vector.shape_cast %129 : vector<5xf32> to vector<5x1xf32>
    %131 = vector.broadcast %130 : vector<5x1xf32> to vector<5x5xf32>
    %132 = arith.subf %128, %131 : vector<5x5xf32>
    %133 = math.exp %132 : vector<5x5xf32>
    %cst_37 = arith.constant dense<0.000000e+00> : vector<5xf32>
    %134 = vector.multi_reduction <add>, %133, %cst_37 [1] : vector<5x5xf32> to vector<5xf32>
    %135 = vector.shape_cast %134 : vector<5xf32> to vector<5x1xf32>
    %136 = tpu.reciprocal %135 {approx = true} : vector<5x1xf32> -> vector<5x1xf32>
    %137 = vector.broadcast %136 : vector<5x1xf32> to vector<5x5xf32>
    %138 = arith.mulf %133, %137 : vector<5x5xf32>
    %cst_38 = arith.constant dense<0.000000e+00> : vector<5x16xf32>
    %139 = tpu.matmul %138, %127, %cst_38 {dimension_numbers = #tpu.dot_dimension_numbers<[1], [0], [0], [1], [0, 0, 1, 1], [], []>} : vector<5x5xf32>, vector<5x16xf32>, vector<5x16xf32> -> vector<5x16xf32>
    %140 = tpu.concatenate %124, %139 in 1 : vector<5x16xf32>, vector<5x16xf32> -> vector<5x32xf32>
    %141 = vector.extract_strided_slice %108 {offsets = [5, 0], sizes = [5, 96], strides = [1, 1]} : vector<10x96xf32> to vector<5x96xf32>
    %142 = vector.extract_strided_slice %141 {offsets = [0, 0], sizes = [5, 16], strides = [1, 1]} : vector<5x96xf32> to vector<5x16xf32>
    %143 = vector.extract_strided_slice %141 {offsets = [0, 32], sizes = [5, 16], strides = [1, 1]} : vector<5x96xf32> to vector<5x16xf32>
    %144 = vector.extract_strided_slice %141 {offsets = [0, 64], sizes = [5, 16], strides = [1, 1]} : vector<5x96xf32> to vector<5x16xf32>
    %cst_39 = arith.constant dense<0.000000e+00> : vector<5x5xf32>
    %145 = tpu.matmul %142, %143, %cst_39 {dimension_numbers = #tpu.dot_dimension_numbers<[1], [1], [0], [0], [0, 0, 1, 0], [], []>} : vector<5x16xf32>, vector<5x16xf32>, vector<5x5xf32> -> vector<5x5xf32>
    %cst_40 = arith.constant dense<0xFF800000> : vector<5xf32>
    %146 = vector.multi_reduction <maximumf>, %145, %cst_40 [1] : vector<5x5xf32> to vector<5xf32>
    %147 = vector.shape_cast %146 : vector<5xf32> to vector<5x1xf32>
    %148 = vector.broadcast %147 : vector<5x1xf32> to vector<5x5xf32>
    %149 = arith.subf %145, %148 : vector<5x5xf32>
    %150 = math.exp %149 : vector<5x5xf32>
    %cst_41 = arith.constant dense<0.000000e+00> : vector<5xf32>
    %151 = vector.multi_reduction <add>, %150, %cst_41 [1] : vector<5x5xf32> to vector<5xf32>
    %152 = vector.shape_cast %151 : vector<5xf32> to vector<5x1xf32>
    %153 = tpu.reciprocal %152 {approx = true} : vector<5x1xf32> -> vector<5x1xf32>
    %154 = vector.broadcast %153 : vector<5x1xf32> to vector<5x5xf32>
    %155 = arith.mulf %150, %154 : vector<5x5xf32>
    %cst_42 = arith.constant dense<0.000000e+00> : vector<5x16xf32>
    %156 = tpu.matmul %155, %144, %cst_42 {dimension_numbers = #tpu.dot_dimension_numbers<[1], [0], [0], [1], [0, 0, 1, 1], [], []>} : vector<5x5xf32>, vector<5x16xf32>, vector<5x16xf32> -> vector<5x16xf32>
    %157 = vector.extract_strided_slice %141 {offsets = [0, 16], sizes = [5, 16], strides = [1, 1]} : vector<5x96xf32> to vector<5x16xf32>
    %158 = vector.extract_strided_slice %141 {offsets = [0, 48], sizes = [5, 16], strides = [1, 1]} : vector<5x96xf32> to vector<5x16xf32>
    %159 = vector.extract_strided_slice %141 {offsets = [0, 80], sizes = [5, 16], strides = [1, 1]} : vector<5x96xf32> to vector<5x16xf32>
    %cst_43 = arith.constant dense<0.000000e+00> : vector<5x5xf32>
    %160 = tpu.matmul %157, %158, %cst_43 {dimension_numbers = #tpu.dot_dimension_numbers<[1], [1], [0], [0], [0, 0, 1, 0], [], []>} : vector<5x16xf32>, vector<5x16xf32>, vector<5x5xf32> -> vector<5x5xf32>
    %cst_44 = arith.constant dense<0xFF800000> : vector<5xf32>
    %161 = vector.multi_reduction <maximumf>, %160, %cst_44 [1] : vector<5x5xf32> to vector<5xf32>
    %162 = vector.shape_cast %161 : vector<5xf32> to vector<5x1xf32>
    %163 = vector.broadcast %162 : vector<5x1xf32> to vector<5x5xf32>
    %164 = arith.subf %160, %163 : vector<5x5xf32>
    %165 = math.exp %164 : vector<5x5xf32>
    %cst_45 = arith.constant dense<0.000000e+00> : vector<5xf32>
    %166 = vector.multi_reduction <add>, %165, %cst_45 [1] : vector<5x5xf32> to vector<5xf32>
    %167 = vector.shape_cast %166 : vector<5xf32> to vector<5x1xf32>
    %168 = tpu.reciprocal %167 {approx = true} : vector<5x1xf32> -> vector<5x1xf32>
    %169 = vector.broadcast %168 : vector<5x1xf32> to vector<5x5xf32>
    %170 = arith.mulf %165, %169 : vector<5x5xf32>
    %cst_46 = arith.constant dense<0.000000e+00> : vector<5x16xf32>
    %171 = tpu.matmul %170, %159, %cst_46 {dimension_numbers = #tpu.dot_dimension_numbers<[1], [0], [0], [1], [0, 0, 1, 1], [], []>} : vector<5x5xf32>, vector<5x16xf32>, vector<5x16xf32> -> vector<5x16xf32>
    %172 = tpu.concatenate %156, %171 in 1 : vector<5x16xf32>, vector<5x16xf32> -> vector<5x32xf32>
    %173 = tpu.concatenate %140, %172 in 0 : vector<5x32xf32>, vector<5x32xf32> -> vector<10x32xf32>
    %c0_47 = arith.constant 0 : index
    %c0_48 = arith.constant 0 : index
    %c0_49 = arith.constant 0 : index
    %174 = vector.load %arg8[%c0_47, %c0_48, %c0_49] : memref<2x32x32xf32, #tpu.memory_space<vmem>>, vector<1x32x32xf32>
    %175 = vector.shape_cast %174 : vector<1x32x32xf32> to vector<32x32xf32>
    %cst_50 = arith.constant dense<0.000000e+00> : vector<10x32xf32>
    %176 = tpu.matmul %173, %175, %cst_50 {dimension_numbers = #tpu.dot_dimension_numbers<[1], [0], [0], [1], [0, 0, 1, 1], [], []>} : vector<10x32xf32>, vector<32x32xf32>, vector<10x32xf32> -> vector<10x32xf32>
    %177 = vector.broadcast %12 : vector<1x32xf32> to vector<10x32xf32>
    %178 = arith.addf %176, %177 : vector<10x32xf32>
    %179 = vector.broadcast %13 : vector<1x32xf32> to vector<10x32xf32>
    %180 = arith.mulf %178, %179 : vector<10x32xf32>
    %181 = arith.mulf %180, %49 : vector<10x32xf32>
    %182 = arith.addf %4, %181 : vector<10x32xf32>
    %cst_51 = arith.constant dense<0.000000e+00> : vector<10xf32>
    %183 = vector.multi_reduction <add>, %182, %cst_51 [1] : vector<10x32xf32> to vector<10xf32>
    %184 = vector.shape_cast %183 : vector<10xf32> to vector<10x1xf32>
    %cst_52 = arith.constant 3.200000e+01 : f32
    %185 = vector.broadcast %cst_52 : f32 to vector<10x1xf32>
    %186 = arith.divf %184, %185 : vector<10x1xf32>
    %187 = vector.broadcast %186 : vector<10x1xf32> to vector<10x32xf32>
    %188 = arith.subf %182, %187 : vector<10x32xf32>
    %189 = arith.mulf %188, %188 : vector<10x32xf32>
    %cst_53 = arith.constant dense<0.000000e+00> : vector<10xf32>
    %190 = vector.multi_reduction <add>, %189, %cst_53 [1] : vector<10x32xf32> to vector<10xf32>
    %191 = vector.shape_cast %190 : vector<10xf32> to vector<10x1xf32>
    %cst_54 = arith.constant 3.200000e+01 : f32
    %192 = vector.broadcast %cst_54 : f32 to vector<10x1xf32>
    %193 = arith.divf %191, %192 : vector<10x1xf32>
    %194 = vector.broadcast %186 : vector<10x1xf32> to vector<10x32xf32>
    %195 = arith.subf %182, %194 : vector<10x32xf32>
    %cst_55 = arith.constant 9.99999997E-7 : f32
    %196 = vector.broadcast %cst_55 : f32 to vector<10x1xf32>
    %197 = arith.addf %193, %196 : vector<10x1xf32>
    %198 = math.rsqrt %197 : vector<10x1xf32>
    %199 = vector.broadcast %198 : vector<10x1xf32> to vector<10x32xf32>
    %200 = arith.mulf %195, %199 : vector<10x32xf32>
    %201 = vector.broadcast %10 : vector<1x32xf32> to vector<10x32xf32>
    %202 = arith.mulf %200, %201 : vector<10x32xf32>
    %203 = vector.broadcast %11 : vector<1x32xf32> to vector<10x32xf32>
    %204 = arith.addf %202, %203 : vector<10x32xf32>
    %205 = arith.mulf %204, %67 : vector<10x32xf32>
    %206 = arith.addf %205, %57 : vector<10x32xf32>
    %c0_56 = arith.constant 0 : index
    %c0_57 = arith.constant 0 : index
    %c0_58 = arith.constant 0 : index
    %207 = vector.load %arg9[%c0_56, %c0_57, %c0_58] : memref<2x32x128xf32, #tpu.memory_space<vmem>>, vector<1x32x128xf32>
    %208 = vector.shape_cast %207 : vector<1x32x128xf32> to vector<32x128xf32>
    %cst_59 = arith.constant dense<0.000000e+00> : vector<10x128xf32>
    %209 = tpu.matmul %206, %208, %cst_59 {dimension_numbers = #tpu.dot_dimension_numbers<[1], [0], [0], [1], [0, 0, 1, 1], [], []>} : vector<10x32xf32>, vector<32x128xf32>, vector<10x128xf32> -> vector<10x128xf32>
    %c0_60 = arith.constant 0 : index
    %c0_61 = arith.constant 0 : index
    %c0_62 = arith.constant 0 : index
    %210 = vector.load %arg10[%c0_60, %c0_61, %c0_62] : memref<2x1x128xf32, #tpu.memory_space<vmem>>, vector<1x1x128xf32>
    %211 = vector.shape_cast %210 : vector<1x1x128xf32> to vector<1x128xf32>
    %212 = vector.broadcast %211 : vector<1x128xf32> to vector<10x128xf32>
    %213 = arith.addf %209, %212 : vector<10x128xf32>
    %cst_63 = arith.constant 5.000000e-01 : f32
    %214 = vector.broadcast %cst_63 : f32 to vector<10x128xf32>
    %215 = arith.mulf %214, %213 : vector<10x128xf32>
    %cst_64 = arith.constant 0.707106769 : f32
    %216 = vector.broadcast %cst_64 : f32 to vector<10x128xf32>
    %217 = arith.mulf %213, %216 : vector<10x128xf32>
    %cst_65 = arith.constant 0.000000e+00 : f32
    %218 = vector.broadcast %cst_65 : f32 to vector<10x128xf32>
    %219 = arith.cmpf oge, %217, %218 : vector<10x128xf32>
    %cst_66 = arith.constant 1.000000e+00 : f32
    %cst_67 = arith.constant -1.000000e+00 : f32
    %220 = vector.broadcast %cst_66 : f32 to vector<10x128xf32>
    %221 = vector.broadcast %cst_67 : f32 to vector<10x128xf32>
    %222 = arith.select %219, %220, %221 : vector<10x128xi1>, vector<10x128xf32>
    %223 = math.absf %217 : vector<10x128xf32>
    %cst_68 = arith.constant 0.327591091 : f32
    %224 = vector.broadcast %cst_68 : f32 to vector<10x128xf32>
    %225 = arith.mulf %224, %223 : vector<10x128xf32>
    %cst_69 = arith.constant 1.000000e+00 : f32
    %226 = vector.broadcast %cst_69 : f32 to vector<10x128xf32>
    %227 = arith.addf %226, %225 : vector<10x128xf32>
    %cst_70 = arith.constant 1.000000e+00 : f32
    %228 = vector.broadcast %cst_70 : f32 to vector<10x128xf32>
    %229 = arith.divf %228, %227 : vector<10x128xf32>
    %cst_71 = arith.constant 1.06140542 : f32
    %230 = vector.broadcast %cst_71 : f32 to vector<10x128xf32>
    %231 = arith.mulf %230, %229 : vector<10x128xf32>
    %cst_72 = arith.constant -1.45315206 : f32
    %232 = vector.broadcast %cst_72 : f32 to vector<10x128xf32>
    %233 = arith.addf %231, %232 : vector<10x128xf32>
    %234 = arith.mulf %233, %229 : vector<10x128xf32>
    %cst_73 = arith.constant 1.42141378 : f32
    %235 = vector.broadcast %cst_73 : f32 to vector<10x128xf32>
    %236 = arith.addf %234, %235 : vector<10x128xf32>
    %237 = arith.mulf %236, %229 : vector<10x128xf32>
    %cst_74 = arith.constant -0.284496725 : f32
    %238 = vector.broadcast %cst_74 : f32 to vector<10x128xf32>
    %239 = arith.addf %237, %238 : vector<10x128xf32>
    %240 = arith.mulf %239, %229 : vector<10x128xf32>
    %cst_75 = arith.constant 0.254829586 : f32
    %241 = vector.broadcast %cst_75 : f32 to vector<10x128xf32>
    %242 = arith.addf %240, %241 : vector<10x128xf32>
    %243 = arith.mulf %242, %229 : vector<10x128xf32>
    %cst_76 = arith.constant 0.000000e+00 : f32
    %244 = vector.broadcast %cst_76 : f32 to vector<10x128xf32>
    %245 = arith.subf %244, %223 : vector<10x128xf32>
    %246 = arith.mulf %245, %223 : vector<10x128xf32>
    %247 = math.exp %246 : vector<10x128xf32>
    %248 = arith.mulf %243, %247 : vector<10x128xf32>
    %cst_77 = arith.constant 1.000000e+00 : f32
    %249 = vector.broadcast %cst_77 : f32 to vector<10x128xf32>
    %250 = arith.subf %249, %248 : vector<10x128xf32>
    %251 = arith.mulf %222, %250 : vector<10x128xf32>
    %cst_78 = arith.constant 1.000000e+00 : f32
    %252 = vector.broadcast %cst_78 : f32 to vector<10x128xf32>
    %253 = arith.addf %252, %251 : vector<10x128xf32>
    %254 = arith.mulf %215, %253 : vector<10x128xf32>
    %c0_79 = arith.constant 0 : index
    %c0_80 = arith.constant 0 : index
    %c0_81 = arith.constant 0 : index
    %255 = vector.load %arg11[%c0_79, %c0_80, %c0_81] : memref<2x128x32xf32, #tpu.memory_space<vmem>>, vector<1x128x32xf32>
    %256 = vector.shape_cast %255 : vector<1x128x32xf32> to vector<128x32xf32>
    %cst_82 = arith.constant dense<0.000000e+00> : vector<10x32xf32>
    %257 = tpu.matmul %254, %256, %cst_82 {dimension_numbers = #tpu.dot_dimension_numbers<[1], [0], [0], [1], [0, 0, 1, 1], [], []>} : vector<10x128xf32>, vector<128x32xf32>, vector<10x32xf32> -> vector<10x32xf32>
    %258 = vector.broadcast %14 : vector<1x32xf32> to vector<10x32xf32>
    %259 = arith.addf %257, %258 : vector<10x32xf32>
    %260 = vector.broadcast %15 : vector<1x32xf32> to vector<10x32xf32>
    %261 = arith.mulf %259, %260 : vector<10x32xf32>
    %262 = arith.mulf %261, %77 : vector<10x32xf32>
    %263 = arith.addf %182, %262 : vector<10x32xf32>
    %c1 = arith.constant 1 : index
    %c0_83 = arith.constant 0 : index
    %c0_84 = arith.constant 0 : index
    %264 = vector.load %arg12[%c1, %c0_83, %c0_84] : memref<2x8x32xf32, #tpu.memory_space<vmem>>, vector<1x8x32xf32>
    %265 = vector.shape_cast %264 : vector<1x8x32xf32> to vector<8x32xf32>
    %266 = vector.extract_strided_slice %265 {offsets = [0, 0], sizes = [1, 32], strides = [1, 1]} : vector<8x32xf32> to vector<1x32xf32>
    %267 = vector.extract_strided_slice %265 {offsets = [1, 0], sizes = [1, 32], strides = [1, 1]} : vector<8x32xf32> to vector<1x32xf32>
    %268 = vector.extract_strided_slice %265 {offsets = [2, 0], sizes = [1, 32], strides = [1, 1]} : vector<8x32xf32> to vector<1x32xf32>
    %269 = vector.extract_strided_slice %265 {offsets = [3, 0], sizes = [1, 32], strides = [1, 1]} : vector<8x32xf32> to vector<1x32xf32>
    %270 = vector.extract_strided_slice %265 {offsets = [4, 0], sizes = [1, 32], strides = [1, 1]} : vector<8x32xf32> to vector<1x32xf32>
    %271 = vector.extract_strided_slice %265 {offsets = [5, 0], sizes = [1, 32], strides = [1, 1]} : vector<8x32xf32> to vector<1x32xf32>
    %272 = vector.extract_strided_slice %265 {offsets = [6, 0], sizes = [1, 32], strides = [1, 1]} : vector<8x32xf32> to vector<1x32xf32>
    %273 = vector.extract_strided_slice %265 {offsets = [7, 0], sizes = [1, 32], strides = [1, 1]} : vector<8x32xf32> to vector<1x32xf32>
    %c1_85 = arith.constant 1 : index
    %c0_86 = arith.constant 0 : index
    %c0_87 = arith.constant 0 : index
    %274 = vector.load %arg5[%c1_85, %c0_86, %c0_87] : memref<2x64x192xf32, #tpu.memory_space<vmem>>, vector<1x64x192xf32>
    %275 = vector.shape_cast %274 : vector<1x64x192xf32> to vector<64x192xf32>
    %cst_88 = arith.constant dense<0.000000e+00> : vector<2x192xf32>
    %276 = tpu.matmul %5, %275, %cst_88 {dimension_numbers = #tpu.dot_dimension_numbers<[1], [0], [0], [1], [0, 0, 1, 1], [], []>} : vector<2x64xf32>, vector<64x192xf32>, vector<2x192xf32> -> vector<2x192xf32>
    %277 = math.tanh %276 : vector<2x192xf32>
    %cst_89 = arith.constant 1.000000e+00 : f32
    %278 = vector.broadcast %cst_89 : f32 to vector<2x192xf32>
    %279 = arith.mulf %277, %278 : vector<2x192xf32>
    %280 = vector.extract_strided_slice %279 {offsets = [0, 0], sizes = [2, 32], strides = [1, 1]} : vector<2x192xf32> to vector<2x32xf32>
    %281 = vector.extract_strided_slice %280 {offsets = [0, 0], sizes = [1, 32], strides = [1, 1]} : vector<2x32xf32> to vector<1x32xf32>
    %282 = vector.shape_cast %281 : vector<1x32xf32> to vector<1x32xf32>
    %283 = vector.broadcast %282 : vector<1x32xf32> to vector<5x32xf32>
    %284 = vector.extract_strided_slice %280 {offsets = [1, 0], sizes = [1, 32], strides = [1, 1]} : vector<2x32xf32> to vector<1x32xf32>
    %285 = vector.shape_cast %284 : vector<1x32xf32> to vector<1x32xf32>
    %286 = vector.broadcast %285 : vector<1x32xf32> to vector<5x32xf32>
    %287 = tpu.concatenate %283, %286 in 0 : vector<5x32xf32>, vector<5x32xf32> -> vector<10x32xf32>
    %288 = vector.extract_strided_slice %279 {offsets = [0, 32], sizes = [2, 32], strides = [1, 1]} : vector<2x192xf32> to vector<2x32xf32>
    %cst_90 = arith.constant 1.000000e+00 : f32
    %289 = vector.broadcast %cst_90 : f32 to vector<2x32xf32>
    %290 = arith.addf %288, %289 : vector<2x32xf32>
    %291 = vector.extract_strided_slice %290 {offsets = [0, 0], sizes = [1, 32], strides = [1, 1]} : vector<2x32xf32> to vector<1x32xf32>
    %292 = vector.shape_cast %291 : vector<1x32xf32> to vector<1x32xf32>
    %293 = vector.broadcast %292 : vector<1x32xf32> to vector<5x32xf32>
    %294 = vector.extract_strided_slice %290 {offsets = [1, 0], sizes = [1, 32], strides = [1, 1]} : vector<2x32xf32> to vector<1x32xf32>
    %295 = vector.shape_cast %294 : vector<1x32xf32> to vector<1x32xf32>
    %296 = vector.broadcast %295 : vector<1x32xf32> to vector<5x32xf32>
    %297 = tpu.concatenate %293, %296 in 0 : vector<5x32xf32>, vector<5x32xf32> -> vector<10x32xf32>
    %298 = vector.extract_strided_slice %279 {offsets = [0, 64], sizes = [2, 32], strides = [1, 1]} : vector<2x192xf32> to vector<2x32xf32>
    %cst_91 = arith.constant 1.000000e+00 : f32
    %299 = vector.broadcast %cst_91 : f32 to vector<2x32xf32>
    %300 = arith.addf %298, %299 : vector<2x32xf32>
    %301 = vector.extract_strided_slice %300 {offsets = [0, 0], sizes = [1, 32], strides = [1, 1]} : vector<2x32xf32> to vector<1x32xf32>
    %302 = vector.shape_cast %301 : vector<1x32xf32> to vector<1x32xf32>
    %303 = vector.broadcast %302 : vector<1x32xf32> to vector<5x32xf32>
    %304 = vector.extract_strided_slice %300 {offsets = [1, 0], sizes = [1, 32], strides = [1, 1]} : vector<2x32xf32> to vector<1x32xf32>
    %305 = vector.shape_cast %304 : vector<1x32xf32> to vector<1x32xf32>
    %306 = vector.broadcast %305 : vector<1x32xf32> to vector<5x32xf32>
    %307 = tpu.concatenate %303, %306 in 0 : vector<5x32xf32>, vector<5x32xf32> -> vector<10x32xf32>
    %308 = vector.extract_strided_slice %279 {offsets = [0, 96], sizes = [2, 32], strides = [1, 1]} : vector<2x192xf32> to vector<2x32xf32>
    %309 = vector.extract_strided_slice %308 {offsets = [0, 0], sizes = [1, 32], strides = [1, 1]} : vector<2x32xf32> to vector<1x32xf32>
    %310 = vector.shape_cast %309 : vector<1x32xf32> to vector<1x32xf32>
    %311 = vector.broadcast %310 : vector<1x32xf32> to vector<5x32xf32>
    %312 = vector.extract_strided_slice %308 {offsets = [1, 0], sizes = [1, 32], strides = [1, 1]} : vector<2x32xf32> to vector<1x32xf32>
    %313 = vector.shape_cast %312 : vector<1x32xf32> to vector<1x32xf32>
    %314 = vector.broadcast %313 : vector<1x32xf32> to vector<5x32xf32>
    %315 = tpu.concatenate %311, %314 in 0 : vector<5x32xf32>, vector<5x32xf32> -> vector<10x32xf32>
    %316 = vector.extract_strided_slice %279 {offsets = [0, 128], sizes = [2, 32], strides = [1, 1]} : vector<2x192xf32> to vector<2x32xf32>
    %cst_92 = arith.constant 1.000000e+00 : f32
    %317 = vector.broadcast %cst_92 : f32 to vector<2x32xf32>
    %318 = arith.addf %316, %317 : vector<2x32xf32>
    %319 = vector.extract_strided_slice %318 {offsets = [0, 0], sizes = [1, 32], strides = [1, 1]} : vector<2x32xf32> to vector<1x32xf32>
    %320 = vector.shape_cast %319 : vector<1x32xf32> to vector<1x32xf32>
    %321 = vector.broadcast %320 : vector<1x32xf32> to vector<5x32xf32>
    %322 = vector.extract_strided_slice %318 {offsets = [1, 0], sizes = [1, 32], strides = [1, 1]} : vector<2x32xf32> to vector<1x32xf32>
    %323 = vector.shape_cast %322 : vector<1x32xf32> to vector<1x32xf32>
    %324 = vector.broadcast %323 : vector<1x32xf32> to vector<5x32xf32>
    %325 = tpu.concatenate %321, %324 in 0 : vector<5x32xf32>, vector<5x32xf32> -> vector<10x32xf32>
    %326 = vector.extract_strided_slice %279 {offsets = [0, 160], sizes = [2, 32], strides = [1, 1]} : vector<2x192xf32> to vector<2x32xf32>
    %cst_93 = arith.constant 1.000000e+00 : f32
    %327 = vector.broadcast %cst_93 : f32 to vector<2x32xf32>
    %328 = arith.addf %326, %327 : vector<2x32xf32>
    %329 = vector.extract_strided_slice %328 {offsets = [0, 0], sizes = [1, 32], strides = [1, 1]} : vector<2x32xf32> to vector<1x32xf32>
    %330 = vector.shape_cast %329 : vector<1x32xf32> to vector<1x32xf32>
    %331 = vector.broadcast %330 : vector<1x32xf32> to vector<5x32xf32>
    %332 = vector.extract_strided_slice %328 {offsets = [1, 0], sizes = [1, 32], strides = [1, 1]} : vector<2x32xf32> to vector<1x32xf32>
    %333 = vector.shape_cast %332 : vector<1x32xf32> to vector<1x32xf32>
    %334 = vector.broadcast %333 : vector<1x32xf32> to vector<5x32xf32>
    %335 = tpu.concatenate %331, %334 in 0 : vector<5x32xf32>, vector<5x32xf32> -> vector<10x32xf32>
    %cst_94 = arith.constant dense<0.000000e+00> : vector<10xf32>
    %336 = vector.multi_reduction <add>, %263, %cst_94 [1] : vector<10x32xf32> to vector<10xf32>
    %337 = vector.shape_cast %336 : vector<10xf32> to vector<10x1xf32>
    %cst_95 = arith.constant 3.200000e+01 : f32
    %338 = vector.broadcast %cst_95 : f32 to vector<10x1xf32>
    %339 = arith.divf %337, %338 : vector<10x1xf32>
    %340 = vector.broadcast %339 : vector<10x1xf32> to vector<10x32xf32>
    %341 = arith.subf %263, %340 : vector<10x32xf32>
    %342 = arith.mulf %341, %341 : vector<10x32xf32>
    %cst_96 = arith.constant dense<0.000000e+00> : vector<10xf32>
    %343 = vector.multi_reduction <add>, %342, %cst_96 [1] : vector<10x32xf32> to vector<10xf32>
    %344 = vector.shape_cast %343 : vector<10xf32> to vector<10x1xf32>
    %cst_97 = arith.constant 3.200000e+01 : f32
    %345 = vector.broadcast %cst_97 : f32 to vector<10x1xf32>
    %346 = arith.divf %344, %345 : vector<10x1xf32>
    %347 = vector.broadcast %339 : vector<10x1xf32> to vector<10x32xf32>
    %348 = arith.subf %263, %347 : vector<10x32xf32>
    %cst_98 = arith.constant 9.99999997E-7 : f32
    %349 = vector.broadcast %cst_98 : f32 to vector<10x1xf32>
    %350 = arith.addf %346, %349 : vector<10x1xf32>
    %351 = math.rsqrt %350 : vector<10x1xf32>
    %352 = vector.broadcast %351 : vector<10x1xf32> to vector<10x32xf32>
    %353 = arith.mulf %348, %352 : vector<10x32xf32>
    %354 = vector.broadcast %266 : vector<1x32xf32> to vector<10x32xf32>
    %355 = arith.mulf %353, %354 : vector<10x32xf32>
    %356 = vector.broadcast %267 : vector<1x32xf32> to vector<10x32xf32>
    %357 = arith.addf %355, %356 : vector<10x32xf32>
    %358 = arith.mulf %357, %297 : vector<10x32xf32>
    %359 = arith.addf %358, %287 : vector<10x32xf32>
    %c1_99 = arith.constant 1 : index
    %c0_100 = arith.constant 0 : index
    %c0_101 = arith.constant 0 : index
    %360 = vector.load %arg6[%c1_99, %c0_100, %c0_101] : memref<2x32x96xf32, #tpu.memory_space<vmem>>, vector<1x32x96xf32>
    %361 = vector.shape_cast %360 : vector<1x32x96xf32> to vector<32x96xf32>
    %cst_102 = arith.constant dense<0.000000e+00> : vector<10x96xf32>
    %362 = tpu.matmul %359, %361, %cst_102 {dimension_numbers = #tpu.dot_dimension_numbers<[1], [0], [0], [1], [0, 0, 1, 1], [], []>} : vector<10x32xf32>, vector<32x96xf32>, vector<10x96xf32> -> vector<10x96xf32>
    %c1_103 = arith.constant 1 : index
    %c0_104 = arith.constant 0 : index
    %c0_105 = arith.constant 0 : index
    %363 = vector.load %arg7[%c1_103, %c0_104, %c0_105] : memref<2x1x96xf32, #tpu.memory_space<vmem>>, vector<1x1x96xf32>
    %364 = vector.shape_cast %363 : vector<1x1x96xf32> to vector<1x96xf32>
    %365 = vector.broadcast %364 : vector<1x96xf32> to vector<10x96xf32>
    %366 = arith.addf %362, %365 : vector<10x96xf32>
    %367 = vector.extract_strided_slice %366 {offsets = [0, 0], sizes = [5, 96], strides = [1, 1]} : vector<10x96xf32> to vector<5x96xf32>
    %368 = vector.extract_strided_slice %367 {offsets = [0, 0], sizes = [5, 16], strides = [1, 1]} : vector<5x96xf32> to vector<5x16xf32>
    %369 = vector.extract_strided_slice %367 {offsets = [0, 32], sizes = [5, 16], strides = [1, 1]} : vector<5x96xf32> to vector<5x16xf32>
    %370 = vector.extract_strided_slice %367 {offsets = [0, 64], sizes = [5, 16], strides = [1, 1]} : vector<5x96xf32> to vector<5x16xf32>
    %cst_106 = arith.constant dense<0.000000e+00> : vector<5x5xf32>
    %371 = tpu.matmul %368, %369, %cst_106 {dimension_numbers = #tpu.dot_dimension_numbers<[1], [1], [0], [0], [0, 0, 1, 0], [], []>} : vector<5x16xf32>, vector<5x16xf32>, vector<5x5xf32> -> vector<5x5xf32>
    %cst_107 = arith.constant dense<0xFF800000> : vector<5xf32>
    %372 = vector.multi_reduction <maximumf>, %371, %cst_107 [1] : vector<5x5xf32> to vector<5xf32>
    %373 = vector.shape_cast %372 : vector<5xf32> to vector<5x1xf32>
    %374 = vector.broadcast %373 : vector<5x1xf32> to vector<5x5xf32>
    %375 = arith.subf %371, %374 : vector<5x5xf32>
    %376 = math.exp %375 : vector<5x5xf32>
    %cst_108 = arith.constant dense<0.000000e+00> : vector<5xf32>
    %377 = vector.multi_reduction <add>, %376, %cst_108 [1] : vector<5x5xf32> to vector<5xf32>
    %378 = vector.shape_cast %377 : vector<5xf32> to vector<5x1xf32>
    %379 = tpu.reciprocal %378 {approx = true} : vector<5x1xf32> -> vector<5x1xf32>
    %380 = vector.broadcast %379 : vector<5x1xf32> to vector<5x5xf32>
    %381 = arith.mulf %376, %380 : vector<5x5xf32>
    %cst_109 = arith.constant dense<0.000000e+00> : vector<5x16xf32>
    %382 = tpu.matmul %381, %370, %cst_109 {dimension_numbers = #tpu.dot_dimension_numbers<[1], [0], [0], [1], [0, 0, 1, 1], [], []>} : vector<5x5xf32>, vector<5x16xf32>, vector<5x16xf32> -> vector<5x16xf32>
    %383 = vector.extract_strided_slice %367 {offsets = [0, 16], sizes = [5, 16], strides = [1, 1]} : vector<5x96xf32> to vector<5x16xf32>
    %384 = vector.extract_strided_slice %367 {offsets = [0, 48], sizes = [5, 16], strides = [1, 1]} : vector<5x96xf32> to vector<5x16xf32>
    %385 = vector.extract_strided_slice %367 {offsets = [0, 80], sizes = [5, 16], strides = [1, 1]} : vector<5x96xf32> to vector<5x16xf32>
    %cst_110 = arith.constant dense<0.000000e+00> : vector<5x5xf32>
    %386 = tpu.matmul %383, %384, %cst_110 {dimension_numbers = #tpu.dot_dimension_numbers<[1], [1], [0], [0], [0, 0, 1, 0], [], []>} : vector<5x16xf32>, vector<5x16xf32>, vector<5x5xf32> -> vector<5x5xf32>
    %cst_111 = arith.constant dense<0xFF800000> : vector<5xf32>
    %387 = vector.multi_reduction <maximumf>, %386, %cst_111 [1] : vector<5x5xf32> to vector<5xf32>
    %388 = vector.shape_cast %387 : vector<5xf32> to vector<5x1xf32>
    %389 = vector.broadcast %388 : vector<5x1xf32> to vector<5x5xf32>
    %390 = arith.subf %386, %389 : vector<5x5xf32>
    %391 = math.exp %390 : vector<5x5xf32>
    %cst_112 = arith.constant dense<0.000000e+00> : vector<5xf32>
    %392 = vector.multi_reduction <add>, %391, %cst_112 [1] : vector<5x5xf32> to vector<5xf32>
    %393 = vector.shape_cast %392 : vector<5xf32> to vector<5x1xf32>
    %394 = tpu.reciprocal %393 {approx = true} : vector<5x1xf32> -> vector<5x1xf32>
    %395 = vector.broadcast %394 : vector<5x1xf32> to vector<5x5xf32>
    %396 = arith.mulf %391, %395 : vector<5x5xf32>
    %cst_113 = arith.constant dense<0.000000e+00> : vector<5x16xf32>
    %397 = tpu.matmul %396, %385, %cst_113 {dimension_numbers = #tpu.dot_dimension_numbers<[1], [0], [0], [1], [0, 0, 1, 1], [], []>} : vector<5x5xf32>, vector<5x16xf32>, vector<5x16xf32> -> vector<5x16xf32>
    %398 = tpu.concatenate %382, %397 in 1 : vector<5x16xf32>, vector<5x16xf32> -> vector<5x32xf32>
    %399 = vector.extract_strided_slice %366 {offsets = [5, 0], sizes = [5, 96], strides = [1, 1]} : vector<10x96xf32> to vector<5x96xf32>
    %400 = vector.extract_strided_slice %399 {offsets = [0, 0], sizes = [5, 16], strides = [1, 1]} : vector<5x96xf32> to vector<5x16xf32>
    %401 = vector.extract_strided_slice %399 {offsets = [0, 32], sizes = [5, 16], strides = [1, 1]} : vector<5x96xf32> to vector<5x16xf32>
    %402 = vector.extract_strided_slice %399 {offsets = [0, 64], sizes = [5, 16], strides = [1, 1]} : vector<5x96xf32> to vector<5x16xf32>
    %cst_114 = arith.constant dense<0.000000e+00> : vector<5x5xf32>
    %403 = tpu.matmul %400, %401, %cst_114 {dimension_numbers = #tpu.dot_dimension_numbers<[1], [1], [0], [0], [0, 0, 1, 0], [], []>} : vector<5x16xf32>, vector<5x16xf32>, vector<5x5xf32> -> vector<5x5xf32>
    %cst_115 = arith.constant dense<0xFF800000> : vector<5xf32>
    %404 = vector.multi_reduction <maximumf>, %403, %cst_115 [1] : vector<5x5xf32> to vector<5xf32>
    %405 = vector.shape_cast %404 : vector<5xf32> to vector<5x1xf32>
    %406 = vector.broadcast %405 : vector<5x1xf32> to vector<5x5xf32>
    %407 = arith.subf %403, %406 : vector<5x5xf32>
    %408 = math.exp %407 : vector<5x5xf32>
    %cst_116 = arith.constant dense<0.000000e+00> : vector<5xf32>
    %409 = vector.multi_reduction <add>, %408, %cst_116 [1] : vector<5x5xf32> to vector<5xf32>
    %410 = vector.shape_cast %409 : vector<5xf32> to vector<5x1xf32>
    %411 = tpu.reciprocal %410 {approx = true} : vector<5x1xf32> -> vector<5x1xf32>
    %412 = vector.broadcast %411 : vector<5x1xf32> to vector<5x5xf32>
    %413 = arith.mulf %408, %412 : vector<5x5xf32>
    %cst_117 = arith.constant dense<0.000000e+00> : vector<5x16xf32>
    %414 = tpu.matmul %413, %402, %cst_117 {dimension_numbers = #tpu.dot_dimension_numbers<[1], [0], [0], [1], [0, 0, 1, 1], [], []>} : vector<5x5xf32>, vector<5x16xf32>, vector<5x16xf32> -> vector<5x16xf32>
    %415 = vector.extract_strided_slice %399 {offsets = [0, 16], sizes = [5, 16], strides = [1, 1]} : vector<5x96xf32> to vector<5x16xf32>
    %416 = vector.extract_strided_slice %399 {offsets = [0, 48], sizes = [5, 16], strides = [1, 1]} : vector<5x96xf32> to vector<5x16xf32>
    %417 = vector.extract_strided_slice %399 {offsets = [0, 80], sizes = [5, 16], strides = [1, 1]} : vector<5x96xf32> to vector<5x16xf32>
    %cst_118 = arith.constant dense<0.000000e+00> : vector<5x5xf32>
    %418 = tpu.matmul %415, %416, %cst_118 {dimension_numbers = #tpu.dot_dimension_numbers<[1], [1], [0], [0], [0, 0, 1, 0], [], []>} : vector<5x16xf32>, vector<5x16xf32>, vector<5x5xf32> -> vector<5x5xf32>
    %cst_119 = arith.constant dense<0xFF800000> : vector<5xf32>
    %419 = vector.multi_reduction <maximumf>, %418, %cst_119 [1] : vector<5x5xf32> to vector<5xf32>
    %420 = vector.shape_cast %419 : vector<5xf32> to vector<5x1xf32>
    %421 = vector.broadcast %420 : vector<5x1xf32> to vector<5x5xf32>
    %422 = arith.subf %418, %421 : vector<5x5xf32>
    %423 = math.exp %422 : vector<5x5xf32>
    %cst_120 = arith.constant dense<0.000000e+00> : vector<5xf32>
    %424 = vector.multi_reduction <add>, %423, %cst_120 [1] : vector<5x5xf32> to vector<5xf32>
    %425 = vector.shape_cast %424 : vector<5xf32> to vector<5x1xf32>
    %426 = tpu.reciprocal %425 {approx = true} : vector<5x1xf32> -> vector<5x1xf32>
    %427 = vector.broadcast %426 : vector<5x1xf32> to vector<5x5xf32>
    %428 = arith.mulf %423, %427 : vector<5x5xf32>
    %cst_121 = arith.constant dense<0.000000e+00> : vector<5x16xf32>
    %429 = tpu.matmul %428, %417, %cst_121 {dimension_numbers = #tpu.dot_dimension_numbers<[1], [0], [0], [1], [0, 0, 1, 1], [], []>} : vector<5x5xf32>, vector<5x16xf32>, vector<5x16xf32> -> vector<5x16xf32>
    %430 = tpu.concatenate %414, %429 in 1 : vector<5x16xf32>, vector<5x16xf32> -> vector<5x32xf32>
    %431 = tpu.concatenate %398, %430 in 0 : vector<5x32xf32>, vector<5x32xf32> -> vector<10x32xf32>
    %c1_122 = arith.constant 1 : index
    %c0_123 = arith.constant 0 : index
    %c0_124 = arith.constant 0 : index
    %432 = vector.load %arg8[%c1_122, %c0_123, %c0_124] : memref<2x32x32xf32, #tpu.memory_space<vmem>>, vector<1x32x32xf32>
    %433 = vector.shape_cast %432 : vector<1x32x32xf32> to vector<32x32xf32>
    %cst_125 = arith.constant dense<0.000000e+00> : vector<10x32xf32>
    %434 = tpu.matmul %431, %433, %cst_125 {dimension_numbers = #tpu.dot_dimension_numbers<[1], [0], [0], [1], [0, 0, 1, 1], [], []>} : vector<10x32xf32>, vector<32x32xf32>, vector<10x32xf32> -> vector<10x32xf32>
    %435 = vector.broadcast %270 : vector<1x32xf32> to vector<10x32xf32>
    %436 = arith.addf %434, %435 : vector<10x32xf32>
    %437 = vector.broadcast %271 : vector<1x32xf32> to vector<10x32xf32>
    %438 = arith.mulf %436, %437 : vector<10x32xf32>
    %439 = arith.mulf %438, %307 : vector<10x32xf32>
    %440 = arith.addf %263, %439 : vector<10x32xf32>
    %cst_126 = arith.constant dense<0.000000e+00> : vector<10xf32>
    %441 = vector.multi_reduction <add>, %440, %cst_126 [1] : vector<10x32xf32> to vector<10xf32>
    %442 = vector.shape_cast %441 : vector<10xf32> to vector<10x1xf32>
    %cst_127 = arith.constant 3.200000e+01 : f32
    %443 = vector.broadcast %cst_127 : f32 to vector<10x1xf32>
    %444 = arith.divf %442, %443 : vector<10x1xf32>
    %445 = vector.broadcast %444 : vector<10x1xf32> to vector<10x32xf32>
    %446 = arith.subf %440, %445 : vector<10x32xf32>
    %447 = arith.mulf %446, %446 : vector<10x32xf32>
    %cst_128 = arith.constant dense<0.000000e+00> : vector<10xf32>
    %448 = vector.multi_reduction <add>, %447, %cst_128 [1] : vector<10x32xf32> to vector<10xf32>
    %449 = vector.shape_cast %448 : vector<10xf32> to vector<10x1xf32>
    %cst_129 = arith.constant 3.200000e+01 : f32
    %450 = vector.broadcast %cst_129 : f32 to vector<10x1xf32>
    %451 = arith.divf %449, %450 : vector<10x1xf32>
    %452 = vector.broadcast %444 : vector<10x1xf32> to vector<10x32xf32>
    %453 = arith.subf %440, %452 : vector<10x32xf32>
    %cst_130 = arith.constant 9.99999997E-7 : f32
    %454 = vector.broadcast %cst_130 : f32 to vector<10x1xf32>
    %455 = arith.addf %451, %454 : vector<10x1xf32>
    %456 = math.rsqrt %455 : vector<10x1xf32>
    %457 = vector.broadcast %456 : vector<10x1xf32> to vector<10x32xf32>
    %458 = arith.mulf %453, %457 : vector<10x32xf32>
    %459 = vector.broadcast %268 : vector<1x32xf32> to vector<10x32xf32>
    %460 = arith.mulf %458, %459 : vector<10x32xf32>
    %461 = vector.broadcast %269 : vector<1x32xf32> to vector<10x32xf32>
    %462 = arith.addf %460, %461 : vector<10x32xf32>
    %463 = arith.mulf %462, %325 : vector<10x32xf32>
    %464 = arith.addf %463, %315 : vector<10x32xf32>
    %c1_131 = arith.constant 1 : index
    %c0_132 = arith.constant 0 : index
    %c0_133 = arith.constant 0 : index
    %465 = vector.load %arg9[%c1_131, %c0_132, %c0_133] : memref<2x32x128xf32, #tpu.memory_space<vmem>>, vector<1x32x128xf32>
    %466 = vector.shape_cast %465 : vector<1x32x128xf32> to vector<32x128xf32>
    %cst_134 = arith.constant dense<0.000000e+00> : vector<10x128xf32>
    %467 = tpu.matmul %464, %466, %cst_134 {dimension_numbers = #tpu.dot_dimension_numbers<[1], [0], [0], [1], [0, 0, 1, 1], [], []>} : vector<10x32xf32>, vector<32x128xf32>, vector<10x128xf32> -> vector<10x128xf32>
    %c1_135 = arith.constant 1 : index
    %c0_136 = arith.constant 0 : index
    %c0_137 = arith.constant 0 : index
    %468 = vector.load %arg10[%c1_135, %c0_136, %c0_137] : memref<2x1x128xf32, #tpu.memory_space<vmem>>, vector<1x1x128xf32>
    %469 = vector.shape_cast %468 : vector<1x1x128xf32> to vector<1x128xf32>
    %470 = vector.broadcast %469 : vector<1x128xf32> to vector<10x128xf32>
    %471 = arith.addf %467, %470 : vector<10x128xf32>
    %cst_138 = arith.constant 5.000000e-01 : f32
    %472 = vector.broadcast %cst_138 : f32 to vector<10x128xf32>
    %473 = arith.mulf %472, %471 : vector<10x128xf32>
    %cst_139 = arith.constant 0.707106769 : f32
    %474 = vector.broadcast %cst_139 : f32 to vector<10x128xf32>
    %475 = arith.mulf %471, %474 : vector<10x128xf32>
    %cst_140 = arith.constant 0.000000e+00 : f32
    %476 = vector.broadcast %cst_140 : f32 to vector<10x128xf32>
    %477 = arith.cmpf oge, %475, %476 : vector<10x128xf32>
    %cst_141 = arith.constant 1.000000e+00 : f32
    %cst_142 = arith.constant -1.000000e+00 : f32
    %478 = vector.broadcast %cst_141 : f32 to vector<10x128xf32>
    %479 = vector.broadcast %cst_142 : f32 to vector<10x128xf32>
    %480 = arith.select %477, %478, %479 : vector<10x128xi1>, vector<10x128xf32>
    %481 = math.absf %475 : vector<10x128xf32>
    %cst_143 = arith.constant 0.327591091 : f32
    %482 = vector.broadcast %cst_143 : f32 to vector<10x128xf32>
    %483 = arith.mulf %482, %481 : vector<10x128xf32>
    %cst_144 = arith.constant 1.000000e+00 : f32
    %484 = vector.broadcast %cst_144 : f32 to vector<10x128xf32>
    %485 = arith.addf %484, %483 : vector<10x128xf32>
    %cst_145 = arith.constant 1.000000e+00 : f32
    %486 = vector.broadcast %cst_145 : f32 to vector<10x128xf32>
    %487 = arith.divf %486, %485 : vector<10x128xf32>
    %cst_146 = arith.constant 1.06140542 : f32
    %488 = vector.broadcast %cst_146 : f32 to vector<10x128xf32>
    %489 = arith.mulf %488, %487 : vector<10x128xf32>
    %cst_147 = arith.constant -1.45315206 : f32
    %490 = vector.broadcast %cst_147 : f32 to vector<10x128xf32>
    %491 = arith.addf %489, %490 : vector<10x128xf32>
    %492 = arith.mulf %491, %487 : vector<10x128xf32>
    %cst_148 = arith.constant 1.42141378 : f32
    %493 = vector.broadcast %cst_148 : f32 to vector<10x128xf32>
    %494 = arith.addf %492, %493 : vector<10x128xf32>
    %495 = arith.mulf %494, %487 : vector<10x128xf32>
    %cst_149 = arith.constant -0.284496725 : f32
    %496 = vector.broadcast %cst_149 : f32 to vector<10x128xf32>
    %497 = arith.addf %495, %496 : vector<10x128xf32>
    %498 = arith.mulf %497, %487 : vector<10x128xf32>
    %cst_150 = arith.constant 0.254829586 : f32
    %499 = vector.broadcast %cst_150 : f32 to vector<10x128xf32>
    %500 = arith.addf %498, %499 : vector<10x128xf32>
    %501 = arith.mulf %500, %487 : vector<10x128xf32>
    %cst_151 = arith.constant 0.000000e+00 : f32
    %502 = vector.broadcast %cst_151 : f32 to vector<10x128xf32>
    %503 = arith.subf %502, %481 : vector<10x128xf32>
    %504 = arith.mulf %503, %481 : vector<10x128xf32>
    %505 = math.exp %504 : vector<10x128xf32>
    %506 = arith.mulf %501, %505 : vector<10x128xf32>
    %cst_152 = arith.constant 1.000000e+00 : f32
    %507 = vector.broadcast %cst_152 : f32 to vector<10x128xf32>
    %508 = arith.subf %507, %506 : vector<10x128xf32>
    %509 = arith.mulf %480, %508 : vector<10x128xf32>
    %cst_153 = arith.constant 1.000000e+00 : f32
    %510 = vector.broadcast %cst_153 : f32 to vector<10x128xf32>
    %511 = arith.addf %510, %509 : vector<10x128xf32>
    %512 = arith.mulf %473, %511 : vector<10x128xf32>
    %c1_154 = arith.constant 1 : index
    %c0_155 = arith.constant 0 : index
    %c0_156 = arith.constant 0 : index
    %513 = vector.load %arg11[%c1_154, %c0_155, %c0_156] : memref<2x128x32xf32, #tpu.memory_space<vmem>>, vector<1x128x32xf32>
    %514 = vector.shape_cast %513 : vector<1x128x32xf32> to vector<128x32xf32>
    %cst_157 = arith.constant dense<0.000000e+00> : vector<10x32xf32>
    %515 = tpu.matmul %512, %514, %cst_157 {dimension_numbers = #tpu.dot_dimension_numbers<[1], [0], [0], [1], [0, 0, 1, 1], [], []>} : vector<10x128xf32>, vector<128x32xf32>, vector<10x32xf32> -> vector<10x32xf32>
    %516 = vector.broadcast %272 : vector<1x32xf32> to vector<10x32xf32>
    %517 = arith.addf %515, %516 : vector<10x32xf32>
    %518 = vector.broadcast %273 : vector<1x32xf32> to vector<10x32xf32>
    %519 = arith.mulf %517, %518 : vector<10x32xf32>
    %520 = arith.mulf %519, %335 : vector<10x32xf32>
    %521 = arith.addf %440, %520 : vector<10x32xf32>
    %c0_158 = arith.constant 0 : index
    %c0_159 = arith.constant 0 : index
    %522 = vector.load %arg13[%c0_158, %c0_159] : memref<2x32xf32, #tpu.memory_space<vmem>>, vector<2x32xf32>
    %523 = vector.extract_strided_slice %522 {offsets = [0, 0], sizes = [1, 32], strides = [1, 1]} : vector<2x32xf32> to vector<1x32xf32>
    %524 = vector.extract_strided_slice %522 {offsets = [1, 0], sizes = [1, 32], strides = [1, 1]} : vector<2x32xf32> to vector<1x32xf32>
    %cst_160 = arith.constant dense<0.000000e+00> : vector<10xf32>
    %525 = vector.multi_reduction <add>, %521, %cst_160 [1] : vector<10x32xf32> to vector<10xf32>
    %526 = vector.shape_cast %525 : vector<10xf32> to vector<10x1xf32>
    %cst_161 = arith.constant 3.200000e+01 : f32
    %527 = vector.broadcast %cst_161 : f32 to vector<10x1xf32>
    %528 = arith.divf %526, %527 : vector<10x1xf32>
    %529 = vector.broadcast %528 : vector<10x1xf32> to vector<10x32xf32>
    %530 = arith.subf %521, %529 : vector<10x32xf32>
    %531 = arith.mulf %530, %530 : vector<10x32xf32>
    %cst_162 = arith.constant dense<0.000000e+00> : vector<10xf32>
    %532 = vector.multi_reduction <add>, %531, %cst_162 [1] : vector<10x32xf32> to vector<10xf32>
    %533 = vector.shape_cast %532 : vector<10xf32> to vector<10x1xf32>
    %cst_163 = arith.constant 3.200000e+01 : f32
    %534 = vector.broadcast %cst_163 : f32 to vector<10x1xf32>
    %535 = arith.divf %533, %534 : vector<10x1xf32>
    %536 = vector.broadcast %528 : vector<10x1xf32> to vector<10x32xf32>
    %537 = arith.subf %521, %536 : vector<10x32xf32>
    %cst_164 = arith.constant 9.99999997E-7 : f32
    %538 = vector.broadcast %cst_164 : f32 to vector<10x1xf32>
    %539 = arith.addf %535, %538 : vector<10x1xf32>
    %540 = math.rsqrt %539 : vector<10x1xf32>
    %541 = vector.broadcast %540 : vector<10x1xf32> to vector<10x32xf32>
    %542 = arith.mulf %537, %541 : vector<10x32xf32>
    %543 = vector.broadcast %523 : vector<1x32xf32> to vector<10x32xf32>
    %544 = arith.mulf %542, %543 : vector<10x32xf32>
    %545 = vector.broadcast %524 : vector<1x32xf32> to vector<10x32xf32>
    %546 = arith.addf %544, %545 : vector<10x32xf32>
    %c0_165 = arith.constant 0 : index
    %c0_166 = arith.constant 0 : index
    %547 = vector.load %arg14[%c0_165, %c0_166] : memref<10x32xf32, #tpu.memory_space<vmem>>, vector<10x32xf32>
    tpu.vector_store %arg14[%c0_165, %c0_166], %546 {strides = array<i32>} : memref<10x32xf32, #tpu.memory_space<vmem>>, vector<10x32xf32>,
    return
  }
  func.func @transform_0(%arg0: i32) -> (i32, i32) {
    %c0_i32 = arith.constant 0 : i32
    %c0_i32_0 = arith.constant 0 : i32
    %c0_i32_1 = arith.constant 0 : i32
    return %c0_i32, %c0_i32_0 : i32, i32
  }
  func.func @transform_1(%arg0: i32) -> (i32, i32) {
    %c0_i32 = arith.constant 0 : i32
    %c0_i32_0 = arith.constant 0 : i32
    %c0_i32_1 = arith.constant 0 : i32
    return %c0_i32, %c0_i32_0 : i32, i32
  }
  func.func @transform_2(%arg0: i32) -> (i32, i32) {
    %c0_i32 = arith.constant 0 : i32
    %c0_i32_0 = arith.constant 0 : i32
    %c0_i32_1 = arith.constant 0 : i32
    return %c0_i32, %c0_i32_0 : i32, i32
  }
  func.func @transform_3(%arg0: i32) -> (i32, i32) {
    %c0_i32 = arith.constant 0 : i32
    %c0_i32_0 = arith.constant 0 : i32
    %c0_i32_1 = arith.constant 0 : i32
    return %c0_i32, %c0_i32_0 : i32, i32
  }
  func.func @transform_4(%arg0: i32) -> (i32, i32, i32) {
    %c0_i32 = arith.constant 0 : i32
    %c0_i32_0 = arith.constant 0 : i32
    %c0_i32_1 = arith.constant 0 : i32
    %c0_i32_2 = arith.constant 0 : i32
    return %c0_i32, %c0_i32_0, %c0_i32_1 : i32, i32, i32
  }
  func.func @transform_5(%arg0: i32) -> (i32, i32, i32) {
    %c0_i32 = arith.constant 0 : i32
    %c0_i32_0 = arith.constant 0 : i32
    %c0_i32_1 = arith.constant 0 : i32
    %c0_i32_2 = arith.constant 0 : i32
    return %c0_i32, %c0_i32_0, %c0_i32_1 : i32, i32, i32
  }
  func.func @transform_6(%arg0: i32) -> (i32, i32, i32) {
    %c0_i32 = arith.constant 0 : i32
    %c0_i32_0 = arith.constant 0 : i32
    %c0_i32_1 = arith.constant 0 : i32
    %c0_i32_2 = arith.constant 0 : i32
    return %c0_i32, %c0_i32_0, %c0_i32_1 : i32, i32, i32
  }
  func.func @transform_7(%arg0: i32) -> (i32, i32, i32) {
    %c0_i32 = arith.constant 0 : i32
    %c0_i32_0 = arith.constant 0 : i32
    %c0_i32_1 = arith.constant 0 : i32
    %c0_i32_2 = arith.constant 0 : i32
    return %c0_i32, %c0_i32_0, %c0_i32_1 : i32, i32, i32
  }
  func.func @transform_8(%arg0: i32) -> (i32, i32, i32) {
    %c0_i32 = arith.constant 0 : i32
    %c0_i32_0 = arith.constant 0 : i32
    %c0_i32_1 = arith.constant 0 : i32
    %c0_i32_2 = arith.constant 0 : i32
    return %c0_i32, %c0_i32_0, %c0_i32_1 : i32, i32, i32
  }
  func.func @transform_9(%arg0: i32) -> (i32, i32, i32) {
    %c0_i32 = arith.constant 0 : i32
    %c0_i32_0 = arith.constant 0 : i32
    %c0_i32_1 = arith.constant 0 : i32
    %c0_i32_2 = arith.constant 0 : i32
    return %c0_i32, %c0_i32_0, %c0_i32_1 : i32, i32, i32
  }
  func.func @transform_10(%arg0: i32) -> (i32, i32, i32) {
    %c0_i32 = arith.constant 0 : i32
    %c0_i32_0 = arith.constant 0 : i32
    %c0_i32_1 = arith.constant 0 : i32
    %c0_i32_2 = arith.constant 0 : i32
    return %c0_i32, %c0_i32_0, %c0_i32_1 : i32, i32, i32
  }
  func.func @transform_11(%arg0: i32) -> (i32, i32, i32) {
    %c0_i32 = arith.constant 0 : i32
    %c0_i32_0 = arith.constant 0 : i32
    %c0_i32_1 = arith.constant 0 : i32
    %c0_i32_2 = arith.constant 0 : i32
    return %c0_i32, %c0_i32_0, %c0_i32_1 : i32, i32, i32
  }
  func.func @transform_12(%arg0: i32) -> (i32, i32) {
    %c0_i32 = arith.constant 0 : i32
    %c0_i32_0 = arith.constant 0 : i32
    %c0_i32_1 = arith.constant 0 : i32
    return %c0_i32, %c0_i32_0 : i32, i32
  }
  func.func @transform_13(%arg0: i32) -> (i32, i32) {
    %c0_i32 = arith.constant 0 : i32
    %c0_i32_0 = arith.constant 0 : i32
    %c0_i32_1 = arith.constant 0 : i32
    return %c0_i32, %c0_i32_0 : i32, i32
  }
}

</mosaic_0001>

<bundles_post_ra>
// kernel: adaln_lora_dinov2_forward.1
= control target key start
LH: loop header
LB: loop body
LE: loop exit
PB: predicated region body
PF: predicated region fallthrough
CT: control target
= control target key end

     0   :  { %v3432_v0 = vmov 0.0   ;;  %vm74_vm0 = vcmask 523264   ;;  %vm283_vm1 = vcmask 261120   ;;  %vm287_vm2 = vcmask 254976   ;;  %s3435_s23 = smov 80   ;;  %s3436_s24 = smov 112   ;;  %s4308_s2 = inlined_call_operand.vmem [shape: f32[192,32], index: 2, kind: input, shape index: {}]   ;;  %s4309_s0 = inlined_call_operand.vmem [shape: f32[10,192], index: 0, kind: input, shape index: {}]   ;;  %s4310_s4 = inlined_call_operand.vmem [shape: f32[2,64,192], index: 4, kind: input, shape index: {}]   ;;  %s4311_s1 = inlined_call_operand.vmem [shape: f32[2,64], index: 1, kind: input, shape index: {}]   ;;  %s4312_s3 = inlined_call_operand.vmem [shape: f32[10,32], index: 3, kind: input, shape index: {}]   ;;  %s4313_s5 = inlined_call_operand.vmem [shape: f32[2,32,96], index: 5, kind: input, shape index: {}]   ;;  %s4314_s11 = inlined_call_operand.vmem [shape: f32[2,8,32], index: 11, kind: input, shape index: {}]   ;;  %s4315_s6 = inlined_call_operand.vmem [shape: f32[2,1,96], index: 6, kind: input, shape index: {}]   ;;  %s4316_s7 = inlined_call_operand.vmem [shape: f32[2,32,32], index: 7, kind: input, shape index: {}]   ;;  %s4317_s8 = inlined_call_operand.vmem [shape: f32[2,32,128], index: 8, kind: input, shape index: {}]   ;;  %s4318_s10 = inlined_call_operand.vmem [shape: f32[2,128,32], index: 10, kind: input, shape index: {}]   ;;  %s4319_s9 = inlined_call_operand.vmem [shape: f32[2,1,128], index: 9, kind: input, shape index: {}]   ;;  %s4320_s12 = inlined_call_operand.vmem [shape: f32[2,32], index: 12, kind: input, shape index: {}]   ;;  %s4321_s13 = inlined_call_operand.vmem [shape: f32[10,32], index: 13, kind: output, shape index: {}]  }
   0x1   :  { %81 = vmatprep.subr.mxu0 %v3432_v0  ;;  %v63_v1 = vld [vmem:[%s4308_s2 + $0x78] sm:$0xff]  ;;  %v62_v2 = vld [vmem:[%s4308_s2 + $0x70] sm:$0xff]  ;;  %v61_v3 = vld [vmem:[%s4308_s2 + $0x68] sm:$0xff]  ;;  %v250_v57 = vlaneseq  ;;  %vm258_vm3 = vcmask 1044480   ;;  %vm3434_vm4 = vmmov 0   ;;  %vm430_vm5 = vcmask 130048  }
   0x2   :  { %82 = vmatpush1.msra.mxu0 %v63_v1  ;;  %v60_v4 = vld [vmem:[%s4308_s2 + $0x60] sm:$0xff]  ;;  %v59_v5 = vld [vmem:[%s4308_s2 + $0x58] sm:$0xff]  ;;  %v58_v6 = vld [vmem:[%s4308_s2 + $0x50] sm:$0xff]  ;;  %vm505_vm6 = vcmask 36864   ;;  %s3437_s25 = smov 64   ;;  %vm519_vm7 = vcmask 39936  }
   0x3   :  { %83 = vmatprep.subr.mxu0 %v3432_v0  ;;  %v45_v7 = vld [vmem:[%s4309_s0 + $0x8] sm:$0xff]  ;;  %v56_v9 = vld [vmem:[%s4308_s2 + $0x40] sm:$0xff]  ;;  %v55_v10 = vld [vmem:[%s4308_s2 + $0x38] sm:$0xff]  ;;  %v3693_v58 = vshrl.u32 %v250_v57, 7  ;;  %s3438_s26 = smov 48   ;;  %vm767_vm8 = vcmask 1042432  }
   0x4   :  { %84 = vmatpush1.msra.mxu0 %v62_v2  ;;  %2927 = vmatprep.mubr.msk.f32.mxu0 %vm74_vm0, %v45_v7  ;;  %v57_v8 = vld [vmem:[%s4308_s2 + $0x48] sm:$0xff]  ;;  %v54_v11 = vld [vmem:[%s4308_s2 + $0x30] sm:$0xff]  ;;  %v52_v13 = vld [vmem:[%s4308_s2 + $0x20] sm:$0xff]  ;;  %s3439_s15 = smov 16   ;;  %s3440_s16 = smov 32  }
   0x5   :  { %85 = vmatprep.subr.mxu0 %v3432_v0  ;;  %v53_v12 = vld [vmem:[%s4308_s2 + $0x28] sm:$0xff]  ;;  %v51_v14 = vld [vmem:[%s4308_s2 + $0x18] sm:$0xff]  ;;  %v50_v15 = vld [vmem:[%s4308_s2 + $0x10] sm:$0xff]  ;;  %v3696_v59 = vsub.s32 0, %v3693_v58  ;;  %v3699_v60 = vsub.s32 1, %v3693_v58 }
   0x6   :  { %86 = vmatpush1.msra.mxu0 %v61_v3  ;;  %v49_v16 = vld [vmem:[%s4308_s2 + $0x8] sm:$0xff]  ;;  %v48_v17 = vld [vmem:[%s4308_s2] sm:$0xff]  ;;  %v71_v18 = vld [vmem:[%s4308_s2 + $0xb8] sm:$0xff] }
   0x7   :  { %87 = vmatprep.subr.mxu0 %v3432_v0  ;;  %v70_v19 = vld [vmem:[%s4308_s2 + $0xb0] sm:$0xff]  ;;  %v69_v20 = vld [vmem:[%s4308_s2 + $0xa8] sm:$0xff]  ;;  %v68_v21 = vld [vmem:[%s4308_s2 + $0xa0] sm:$0xff] }
   0x8   :  { %88 = vmatpush1.msra.mxu0 %v60_v4  ;;  %v67_v22 = vld [vmem:[%s4308_s2 + $0x98] sm:$0xff]  ;;  %v66_v23 = vld [vmem:[%s4308_s2 + $0x90] sm:$0xff]  ;;  %v65_v24 = vld [vmem:[%s4308_s2 + $0x88] sm:$0xff] }
   0x9   :  { %89 = vmatprep.subr.mxu0 %v3432_v0  ;;  %v64_v25 = vld [vmem:[%s4308_s2 + $0x80] sm:$0xff]  ;;  %v173_v27 = vld [vmem:[%s4310_s4 + $0x78] sm:$0xff]  ;;  %v172_v29 = vld [vmem:[%s4310_s4 + $0x70] sm:$0xff] }
   0xa   :  { %90 = vmatpush1.msra.mxu0 %v59_v5  ;;  %v44_v26 = vld [vmem:[%s4309_s0] sm:$0xff]  ;;  %v47_v28 = vld [vmem:[%s4309_s0 + $0x18] sm:$0x3]  ;;  %v171_v30 = vld [vmem:[%s4310_s4 + $0x68] sm:$0xff] }
   0xb   :  { %91 = vmatprep.subr.mxu0 %v3432_v0  ;;  %v170_v31 = vld [vmem:[%s4310_s4 + $0x60] sm:$0xff]  ;;  %v46_v32 = vld [vmem:[%s4309_s0 + $0x10] sm:$0x3]  ;;  %v169_v33 = vld [vmem:[%s4310_s4 + $0x58] sm:$0xff] }
   0xc   :  { %92 = vmatpush1.msra.mxu0 %v58_v6  ;;  %v168_v34 = vld [vmem:[%s4310_s4 + $0x50] sm:$0xff]  ;;  %v167_v35 = vld [vmem:[%s4310_s4 + $0x48] sm:$0xff]  ;;  %v166_v36 = vld [vmem:[%s4310_s4 + $0x40] sm:$0xff] }
   0xd   :  { %93 = vmatprep.subr.mxu0 %v3432_v0  ;;  %v165_v37 = vld [vmem:[%s4310_s4 + $0x38] sm:$0xff]  ;;  %v164_v38 = vld [vmem:[%s4310_s4 + $0x30] sm:$0xff]  ;;  %v163_v39 = vld [vmem:[%s4310_s4 + $0x28] sm:$0xff] }
   0xe   :  { %94 = vmatpush1.msra.mxu0 %v57_v8  ;;  %v162_v40 = vld [vmem:[%s4310_s4 + $0x20] sm:$0xff]  ;;  %v161_v41 = vld [vmem:[%s4310_s4 + $0x18] sm:$0xff]  ;;  %v160_v42 = vld [vmem:[%s4310_s4 + $0x10] sm:$0xff] }
   0xf   :  { %95 = vmatprep.subr.mxu0 %v3432_v0  ;;  %v159_v43 = vld [vmem:[%s4310_s4 + $0x8] sm:$0xff]  ;;  %v158_v44 = vld [vmem:[%s4310_s4] sm:$0xff] }
  0x10   :  { %96 = vmatpush1.msra.mxu0 %v56_v9  ;;  %v3674_v45 = vld [vmem:[%s4311_s1] sm:$0x3]  ;;  %v73_v50 = vld [vmem:[%s4312_s3 + $0x8] sm:$0x3]  ;;  %s3433_s1 = smov 96  }
  0x11   :  { %97 = vmatprep.subr.mxu0 %v3432_v0  ;;  %v72_v46 = vld [vmem:[%s4312_s3] sm:$0xff] }
  0x12   :  { %98 = vmatpush1.msra.mxu0 %v55_v10 }
  0x13   :  { %99 = vmatprep.subr.mxu0 %v3432_v0 }
  0x14   :  { %100 = vmatpush1.msra.mxu0 %v54_v11 }
  0x15   :  { %101 = vmatprep.subr.mxu0 %v3432_v0 }
  0x16   :  { %102 = vmatpush1.msra.mxu0 %v53_v12 }
  0x17   :  { %103 = vmatprep.subr.mxu0 %v3432_v0 }
  0x18   :  { %104 = vmatpush1.msra.mxu0 %v52_v13  ;;  %v338_v13 = vld [vmem:[%s4313_s5 + $0x18] sm:$0xff] }
  0x19   :  { %105 = vmatprep.subr.mxu0 %v3432_v0  ;;  %3130 = vmatprep.subr.mxu1 %v338_v13 }
  0x1a   :  { %106 = vmatpush1.msra.mxu0 %v51_v14  ;;  %3131 = vmatpush3.msra.mxu1 %v338_v13  ;;  %v337_v14 = vld [vmem:[%s4313_s5 + $0x10] sm:$0xff] }
  0x1b   :  { %107 = vmatprep.subr.mxu0 %v3432_v0  ;;  %3132 = vmatprep.subr.mxu1 %v337_v14 }
  0x1c   :  { %108 = vmatpush1.msra.mxu0 %v50_v15  ;;  %3133 = vmatpush3.msra.mxu1 %v337_v14  ;;  %v336_v15 = vld [vmem:[%s4313_s5 + $0x8] sm:$0xff] }
  0x1d   :  { %109 = vmatprep.subr.mxu0 %v3432_v0  ;;  %3134 = vmatprep.subr.mxu1 %v336_v15 }
  0x1e   :  { %110 = vmatpush1.msra.mxu0 %v49_v16  ;;  %3135 = vmatpush3.msra.mxu1 %v336_v15  ;;  %v335_v16 = vld [vmem:[%s4313_s5] sm:$0xff] }
  0x1f   :  { %111 = vmatprep.subr.mxu0 %v3432_v0  ;;  %3136 = vmatprep.subr.mxu1 %v335_v16 }
  0x20   :  { %112 = vmatpush1.msra.mxu0 %v48_v17  ;;  %3137 = vmatpush3.msra.mxu1 %v335_v16 }
  0x21   :  { %129 = vmatprep.subr.mxu0 %v3432_v0  ;;  %3141 = vmatprep.subr.mxu1 %v3432_v0 }
  0x22   :  { %130 = vmatpush2.msra.mxu0 %v71_v18 }
  0x23   :  { %131 = vmatprep.subr.mxu0 %v3432_v0 }
  0x24   :  { %132 = vmatpush2.msra.mxu0 %v70_v19 }
  0x25   :  { %133 = vmatprep.subr.mxu0 %v3432_v0 }
  0x26   :  { %134 = vmatpush2.msra.mxu0 %v69_v20 }
  0x27   :  { %135 = vmatprep.subr.mxu0 %v3432_v0 }
  0x28   :  { %136 = vmatpush2.msra.mxu0 %v68_v21 }
  0x29   :  { %137 = vmatprep.subr.mxu0 %v3432_v0 }
  0x2a   :  { %138 = vmatpush2.msra.mxu0 %v67_v22 }
  0x2b   :  { %139 = vmatprep.subr.mxu0 %v3432_v0 }
  0x2c   :  { %140 = vmatpush2.msra.mxu0 %v66_v23  ;;  %v3733_v23 = vld [vmem:[%s4314_s11] sm:$0xff] }
  0x2d   :  { %141 = vmatprep.subr.mxu0 %v3432_v0 }
  0x2e   :  { %142 = vmatpush2.msra.mxu0 %v65_v24  ;;  %v315_v24 = vrot.slane %v3733_v23, %v3696_v59 }
  0x2f   :  { %143 = vmatprep.subr.mxu0 %v3432_v0 }
  0x30   :  { %144 = vmatpush2.msra.mxu0 %v64_v25 }
  0x31   :  { %146 = vmatmul.mubr.f32.vlgmr.msra.gmra.mxu0 %v44_v26  ;;  %193 = vmatprep.subr.mxu0 %v173_v27  ;;  %v321_v27 = vrot.slane %v3733_v23, %v3699_v60 }
  0x32   :  { %2928 = vmatprep.mubr.msk.f32.mxu0 %vm74_vm0, %v47_v28  ;;  %194 = vmatpush1.msra.mxu0 %v172_v29 }
  0x33   :  { %195 = vmatprep.subr.mxu0 %v171_v30 }
  0x34   :  { %196 = vmatpush1.msra.mxu0 %v170_v31 }
  0x35   :  { %151 = vmatmul.mubr.f32.gmra.mxu0 %v46_v32  ;;  %197 = vmatprep.subr.mxu0 %v169_v33 }
  0x36   :  { %198 = vmatpush1.msra.mxu0 %v168_v34  ;;  %241 = vmatprep.mubr.f32.mxu0 %v3432_v0 }
  0x37   :  { %199 = vmatprep.subr.mxu0 %v167_v35 }
  0x38   :  { %200 = vmatpush1.msra.mxu0 %v166_v36 }
  0x39   :  { %201 = vmatprep.subr.mxu0 %v165_v37 }
  0x3a   :  { %202 = vmatpush1.msra.mxu0 %v164_v38 }
  0x3b   :  { %203 = vmatprep.subr.mxu0 %v163_v39 }
  0x3c   :  { %204 = vmatpush1.msra.mxu0 %v162_v40 }
  0x3d   :  { %205 = vmatprep.subr.mxu0 %v161_v41 }
  0x3e   :  { %206 = vmatpush1.msra.mxu0 %v160_v42 }
  0x3f   :  { %207 = vmatprep.subr.mxu0 %v159_v43  ;;  %v2930_v43 = vld [vmem:[%s4315_s6] ss:$0 sm:$0xff] }
  0x40   :  { %208 = vmatpush1.msra.mxu0 %v158_v44 }
  0x41   :  { %2929 = vmatmul.mubr.msk.f32.vlgmr.msra.gmra.mxu0 %vm74_vm0, %v3674_v45  ;;  %3176 = vmatprep.subr.mxu0 %v3432_v0 }
  0x42   :  { %3178 = vmatprep.mubr.msk.f32.mxu0 %vm3434_vm4, %v3432_v0 }
  0xf1   :  { %v147_v47 = vpop.f32.mrf.mxu0 }
  0xf2   :  { %v3682_v48 = vadd.f32 %v147_v47, %v72_v46 }
  0xf3   :  { %v149_v49 = vpop.f32.mrf.mxu0 }
  0xf4   :  { %v284_v51 = vsel %vm283_vm1, %v3682_v48, 0.0 }
  0xf5   :  { %v152_v52 = vpop.f32.mrf.mxu0  ;;  %285 = vadd.xlane.f32.xlu0 %v284_v51 }
  0xf6   :  { %v3689_v53 = vadd.f32 %v152_v52, %v73_v50 }
  0xf7   :  { %v154_v54 = vpop.f32.mrf.mxu0 }
  0xf8   :  { %v288_v55 = vsel %vm287_vm2, %v3689_v53, 0.0 }
  0xf9   :  { %289 = vadd.xlane.f32.xlu0 %v288_v55 }
 0x101   :  { %v243_v56 = vpop.f32.mrf.mxu0 }
 0x102   :  { %3356 = vtanh.f32 %v243_v56 }
 0x10f   :  { %v3357_v61 = vpop.eup %3356 }
 0x110   :  { %v260_v62 = vadd.f32 1.0, %v3357_v61  ;;  %v3740_v31 = vrot.slane %v3357_v61, %v3699_v60  ;;  %v253_v32 = vrot.slane %v3357_v61, %v3696_v59 }
 0x112   :  { %v264_v63 = vrot.slane %v260_v62, %v3696_v59  ;;  %v3703_v1 = vrot.slane %v260_v62, %v3699_v60  ;;  %v3745_v37 = vsel %vm258_vm3, %v253_v32, %v3740_v31 }
 0x114   :  { %v3707_v2 = vsel %vm258_vm3, %v264_v63, %v3703_v1 }
 0x115   :  { %325 = vrot.lane.b32.xlu0 %v3707_v2, %s3433_s1 }
 0x17e   :  { %v286_v3 = vpop.xlane.xlu0 %285 }
 0x17f   :  { %v292_v4 = vmul.f32 0.03125, %v286_v3 }
 0x181   :  { %v294_v5 = vsub.f32 %v3682_v48, %v292_v4 }
 0x182   :  { %v290_v6 = vpop.xlane.xlu0 %289 }
 0x183   :  { %v293_v7 = vmul.f32 0.03125, %v290_v6  ;;  %v296_v8 = vmul.f32 %v294_v5, %v294_v5 }
 0x185   :  { %v295_v9 = vsub.f32 %v3689_v53, %v293_v7  ;;  %v298_v10 = vsel %vm283_vm1, %v296_v8, 0.0 }
 0x186   :  { %299 = vadd.xlane.f32.xlu1 %v298_v10 }
 0x187   :  { %v297_v11 = vmul.f32 %v295_v9, %v295_v9  ;;  %v326_v30 = vpop.permute.xlu0 %325 }
 0x189   :  { %v301_v12 = vsel %vm287_vm2, %v297_v11, 0.0 }
 0x18a   :  { %302 = vadd.xlane.f32.xlu1 %v301_v12 }
 0x19b   :  { %327 = vrot.lane.b32.xlu1 %v3703_v1, %s3433_s1 }
 0x20f   :  { %v300_v17 = vpop.xlane.xlu1 %299 }
 0x210   :  { %v304_v18 = vmul.f32 0.03125, %v300_v17 }
 0x212   :  { %v306_v19 = vadd.f32 1e-06, %v304_v18 }
 0x213   :  { %v303_v20 = vpop.xlane.xlu1 %302 }
 0x214   :  { %3358 = vrsqrt.f32 %v306_v19  ;;  %v305_v21 = vmul.f32 0.03125, %v303_v20 }
 0x216   :  { %v307_v22 = vadd.f32 1e-06, %v305_v21 }
 0x217   :  { %v328_v40 = vpop.permute.xlu1 %327 }
 0x218   :  { %3360 = vrsqrt.f32 %v307_v22 }
 0x221   :  { %v3359_v25 = vpop.eup %3358 }
 0x222   :  { %v310_v26 = vmul.f32 %v3359_v25, %v294_v5 }
 0x224   :  { %v316_v28 = vmul.f32 %v315_v24, %v310_v26 }
 0x225   :  { %v3361_v29 = vpop.eup %3360 }
 0x226   :  { %v322_v33 = vadd.f32 %v321_v27, %v316_v28  ;;  %v311_v34 = vmul.f32 %v3361_v29, %v295_v9 }
 0x228   :  { %v331_v35 = vmul.f32 %v326_v30, %v322_v33  ;;  %v317_v36 = vmul.f32 %v315_v24, %v311_v34 }
 0x22a   :  { %v323_v38 = vadd.f32 %v321_v27, %v317_v36  ;;  %v333_v39 = vadd.f32 %v331_v35, %v3745_v37 }
 0x22c   :  { %v332_v41 = vmul.f32 %v328_v40, %v323_v38  ;;  %3138 = vmatprep.mubr.msk.f32.mxu1 %vm283_vm1, %v333_v39 }
 0x22e   :  { %v334_v42 = vadd.f32 %v332_v41, %v3740_v31 }
 0x230   :  { %3139 = vmatmul.mubr.msk.f32.vlgmr.msra.gmra.mxu1 %vm283_vm1, %v334_v42 }
 0x231   :  { %3143 = vmatprep.mubr.msk.f32.mxu1 %vm3434_vm4, %v3432_v0 }
 0x2f0   :  { %v3140_v44 = vpop.f32.mrf.mxu1 }
 0x2f1   :  { %v3758_v46 = vadd.f32 %v3140_v44, %v2930_v43 }
 0x2f2   :  { %v418_v47 = vpop.f32.mrf.mxu1 }
 0x2f3   :  { %v3760_v49 = vadd.f32 %v2930_v43, %v418_v47  ;;  %v769_v20 = vrot.slane %v3758_v46, 5 }
 0x2f5   :  { %428 = vrot.lane.b32.xlu1 %v3760_v49, %s3433_s1  ;;  %v768_v19 = vrot.slane %v3760_v49, 5 }
 0x2f7   :  { %v770_v21 = vsel %vm767_vm8, %v768_v19, %v769_v20 }
 0x367   :  { %v429_v50 = vpop.permute.xlu1 %428 }
 0x368   :  { %3142 = vmatpush3.xpose.msk.msra.mxu1 %vm430_vm5, %v429_v50 }
 0x369   :  { %3146 = vmatprep.subr.mxu1 %v3432_v0 }
 0x36b   :  { %3144 = vmatmul.mubr.msk.f32.vlgmr.msra.gmra.mxu1 %vm430_vm5, %v3760_v49 }
 0x36c   :  { %3148 = vmatprep.mubr.msk.f32.mxu1 %vm3434_vm4, %v3432_v0 }
 0x42b   :  { %v501_v51 = vpop.f32.mrf.mxu1 }
 0x42c   :  { %v506_v52 = vsel %vm505_vm6, %v501_v51, -inf }
 0x42d   :  { %507 = vmax.xlane.f32.xlu1 %v506_v52  ;;  %v3145_v54 = vpop.f32.mrf.mxu1 }
 0x43e   :  { %597 = vrot.lane.b32.xlu1 %v3760_v49, %s3435_s23 }
 0x442   :  { %595 = vrot.lane.b32.xlu1 %v3760_v49, %s3436_s24 }
 0x4b6   :  { %v508_v55 = vpop.xlane.xlu1 %507 }
 0x4b7   :  { %v509_v56 = vsub.f32 %v501_v51, %v508_v55 }
 0x4b9   :  { %v510_v57 = vmul.f32 1.442695, %v509_v56 }
 0x4ba   :  { %v598_v5 = vpop.permute.xlu1 %597 }
 0x4bb   :  { %3362 = vpow2.f32 %v510_v57 }
 0x4be   :  { %v596_v7 = vpop.permute.xlu1 %595 }
 0x4c8   :  { %v3363_v61 = vpop.eup %3362 }
 0x4c9   :  { %v512_v62 = vsel %vm505_vm6, %v3363_v61, 0.0 }
 0x4ca   :  { %513 = vadd.xlane.f32.xlu0 %v512_v62 }
 0x4e0   :  { %517 = vrot.lane.b32.xlu0 %v3760_v49, %s3437_s25 }
 0x553   :  { %v514_v63 = vpop.xlane.xlu0 %513 }
 0x554   :  { %3364 = vrcp.f32 %v514_v63 }
 0x557   :  { %v518_v3 = vpop.permute.xlu0 %517 }
 0x558   :  { %3147 = vmatpush3.msk.msra.mxu1 %vm258_vm3, %v518_v3 }
 0x559   :  { %3151 = vmatprep.subr.mxu1 %v3432_v0 }
 0x561   :  { %v3365_v4 = vpop.eup %3364 }
 0x562   :  { %v516_v6 = vmul.f32 %v3365_v4, %v3363_v61  ;;  %v1113_v4 = vld [vmem:[%s4316_s7 + $0x18] sm:$0xff] }
 0x564   :  { %3149 = vmatmul.mubr.msk.f32.vlgmr.msra.gmra.mxu1 %vm519_vm7, %v516_v6  ;;  %v1110_v6 = vld [vmem:[%s4316_s7] sm:$0xff] }
 0x565   :  { %3152 = vmatpush3.xpose.msk.msra.mxu1 %vm430_vm5, %v598_v5  ;;  %3153 = vmatprep.mubr.msk.f32.mxu1 %vm3434_vm4, %v3432_v0  ;;  %v1112_v5 = vld [vmem:[%s4316_s7 + $0x10] sm:$0xff] }
 0x566   :  { %3156 = vmatprep.subr.mxu1 %v3432_v0 }
 0x568   :  { %3154 = vmatmul.mubr.msk.f32.vlgmr.msra.gmra.mxu1 %vm430_vm5, %v596_v7  ;;  %v245_v7 = vpop.f32.mrf.mxu0 }
 0x569   :  { %3158 = vmatprep.mubr.msk.f32.mxu1 %vm3434_vm4, %v3432_v0 }
 0x624   :  { %v3788_v8 = vpop.f32.mrf.mxu1 }
 0x626   :  { %v3150_v9 = vpop.f32.mrf.mxu1 }
 0x628   :  { %v669_v10 = vpop.f32.mrf.mxu1 }
 0x629   :  { %v673_v11 = vsel %vm505_vm6, %v669_v10, -inf }
 0x62a   :  { %674 = vmax.xlane.f32.xlu0 %v673_v11  ;;  %v3155_v12 = vpop.f32.mrf.mxu1 }
 0x640   :  { %684 = vrot.lane.b32.xlu0 %v3760_v49, %s3438_s26 }
 0x6b3   :  { %v675_v13 = vpop.xlane.xlu0 %674 }
 0x6b4   :  { %v676_v14 = vsub.f32 %v669_v10, %v675_v13 }
 0x6b6   :  { %v677_v15 = vmul.f32 1.442695, %v676_v14 }
 0x6b7   :  { %v685_v16 = vpop.permute.xlu0 %684 }
 0x6b8   :  { %3366 = vpow2.f32 %v677_v15  ;;  %3157 = vmatpush3.msk.msra.mxu1 %vm258_vm3, %v685_v16 }
 0x6b9   :  { %3161 = vmatprep.subr.mxu1 %v3432_v0 }
 0x6c5   :  { %v3367_v17 = vpop.eup %3366 }
 0x6c6   :  { %v679_v18 = vsel %vm505_vm6, %v3367_v17, 0.0 }
 0x6c7   :  { %680 = vadd.xlane.f32.xlu1 %v679_v18  ;;  %v1200_v18 = vsub.s32 5, %v3693_v58 }
 0x6c9   :  { %v1201_v19 = vrot.slane %v3733_v23, %v1200_v18 }
 0x6d8   :  { %771 = vrot.lane.b32.xlu1 %v770_v21, %s3433_s1 }
 0x750   :  { %v681_v22 = vpop.xlane.xlu1 %680 }
 0x751   :  { %3368 = vrcp.f32 %v681_v22 }
 0x754   :  { %v772_v26 = vpop.permute.xlu1 %771 }
 0x75e   :  { %v3369_v24 = vpop.eup %3368 }
 0x75f   :  { %v683_v25 = vmul.f32 %v3369_v24, %v3367_v17  ;;  %v1116_v17 = vsub.s32 4, %v3693_v58 }
 0x761   :  { %3159 = vmatmul.mubr.msk.f32.vlgmr.msra.gmra.mxu1 %vm519_vm7, %v683_v25 }
 0x762   :  { %3162 = vmatpush3.xpose.msk.msra.mxu1 %vm430_vm5, %v772_v26  ;;  %3163 = vmatprep.mubr.msk.f32.mxu1 %vm3434_vm4, %v3432_v0 }
 0x763   :  { %3166 = vmatprep.subr.mxu1 %v3432_v0 }
 0x765   :  { %3164 = vmatmul.mubr.msk.f32.vlgmr.msra.gmra.mxu1 %vm430_vm5, %v770_v21 }
 0x766   :  { %3168 = vmatprep.mubr.msk.f32.mxu1 %vm3434_vm4, %v3432_v0 }
 0x821   :  { %v3808_v27 = vpop.f32.mrf.mxu1 }
 0x823   :  { %v3160_v28 = vpop.f32.mrf.mxu1 }
 0x825   :  { %v843_v29 = vpop.f32.mrf.mxu1 }
 0x826   :  { %v847_v30 = vsel %vm505_vm6, %v843_v29, -inf }
 0x827   :  { %848 = vmax.xlane.f32.xlu0 %v847_v30  ;;  %v3165_v32 = vpop.f32.mrf.mxu1 }
 0x83d   :  { %858 = vrot.lane.b32.xlu0 %v770_v21, %s3437_s25 }
 0x841   :  { %935 = vrot.lane.b32.xlu0 %v770_v21, %s3436_s24 }
 0x8b0   :  { %v849_v33 = vpop.xlane.xlu0 %848 }
 0x8b1   :  { %v850_v34 = vsub.f32 %v843_v29, %v849_v33 }
 0x8b3   :  { %v851_v35 = vmul.f32 1.442695, %v850_v34 }
 0x8b4   :  { %v859_v36 = vpop.permute.xlu0 %858 }
 0x8b5   :  { %3370 = vpow2.f32 %v851_v35  ;;  %3167 = vmatpush3.msk.msra.mxu1 %vm258_vm3, %v859_v36 }
 0x8b6   :  { %3171 = vmatprep.subr.mxu1 %v3432_v0 }
 0x8b8   :  { %v936_v44 = vpop.permute.xlu0 %935 }
 0x8c2   :  { %v3371_v38 = vpop.eup %3370 }
 0x8c3   :  { %v853_v39 = vsel %vm505_vm6, %v3371_v38, 0.0 }
 0x8c4   :  { %854 = vadd.xlane.f32.xlu1 %v853_v39 }
 0x8d5   :  { %937 = vrot.lane.b32.xlu1 %v770_v21, %s3435_s23 }
 0x94d   :  { %v855_v40 = vpop.xlane.xlu1 %854 }
 0x94e   :  { %3372 = vrcp.f32 %v855_v40 }
 0x951   :  { %v938_v43 = vpop.permute.xlu1 %937 }
 0x95b   :  { %v3373_v41 = vpop.eup %3372 }
 0x95c   :  { %v857_v42 = vmul.f32 %v3373_v41, %v3371_v38 }
 0x95e   :  { %3169 = vmatmul.mubr.msk.f32.vlgmr.msra.gmra.mxu1 %vm519_vm7, %v857_v42 }
 0x95f   :  { %3172 = vmatpush3.xpose.msk.msra.mxu1 %vm430_vm5, %v938_v43  ;;  %3173 = vmatprep.mubr.msk.f32.mxu1 %vm3434_vm4, %v3432_v0 }
 0x960   :  { %3181 = vmatprep.subr.mxu1 %v1113_v4 }
 0x962   :  { %3174 = vmatmul.mubr.msk.f32.vlgmr.msra.gmra.mxu1 %vm430_vm5, %v936_v44 }
 0x963   :  { %3182 = vmatpush3.msra.mxu1 %v1113_v4 }
 0x964   :  { %3183 = vmatprep.subr.mxu1 %v1112_v5 }
 0x965   :  { %3184 = vmatpush3.msra.mxu1 %v1112_v5 }
 0xa1e   :  { %v931_v46 = vpop.f32.mrf.mxu1 }
 0xa20   :  { %v3170_v47 = vpop.f32.mrf.mxu1 }
 0xa22   :  { %v1009_v49 = vpop.f32.mrf.mxu1 }
 0xa23   :  { %v1013_v50 = vsel %vm505_vm6, %v1009_v49, -inf }
 0xa24   :  { %1014 = vmax.xlane.f32.xlu1 %v1013_v50  ;;  %v3175_v51 = vpop.f32.mrf.mxu1  ;;  %v1266_v50 = vld [vmem:[%s4317_s8 + $0x18] sm:$0xff] }
 0xa25   :  { %v1265_v51 = vld [vmem:[%s4317_s8 + $0x10] sm:$0xff] }
 0xaad   :  { %v1015_v52 = vpop.xlane.xlu1 %1014 }
 0xaae   :  { %v1016_v54 = vsub.f32 %v1009_v49, %v1015_v52  ;;  %v1264_v52 = vld [vmem:[%s4317_s8 + $0x8] sm:$0xff] }
 0xab0   :  { %v1017_v55 = vmul.f32 1.442695, %v1016_v54 }
 0xab2   :  { %3374 = vpow2.f32 %v1017_v55 }
 0xabf   :  { %v3375_v56 = vpop.eup %3374 }
 0xac0   :  { %v1019_v57 = vsel %vm505_vm6, %v3375_v56, 0.0 }
 0xac1   :  { %1020 = vadd.xlane.f32.xlu0 %v1019_v57 }
 0xad7   :  { %1024 = vrot.lane.b32.xlu0 %v770_v21, %s3438_s26 }
 0xadb   :  { %1204 = vrot.lane.b32.xlu0 %v3707_v2, %s3437_s25  ;;  %v1111_v2 = vld [vmem:[%s4316_s7 + $0x8] sm:$0xff] }
 0xadc   :  { %3185 = vmatprep.subr.mxu1 %v1111_v2 }
 0xadd   :  { %3186 = vmatpush3.msra.mxu1 %v1111_v2 }
 0xade   :  { %3187 = vmatprep.subr.mxu1 %v1110_v6 }
 0xadf   :  { %3188 = vmatpush3.msra.mxu1 %v1110_v6 }
 0xb4a   :  { %v1021_v61 = vpop.xlane.xlu0 %1020 }
 0xb4b   :  { %3376 = vrcp.f32 %v1021_v61 }
 0xb4c   :  { %3378 = vtanh.f32 %v245_v7 }
 0xb4e   :  { %v1025_v62 = vpop.permute.xlu0 %1024 }
 0xb4f   :  { %3177 = vmatpush3.msk.msra.mxu0 %vm258_vm3, %v1025_v62 }
 0xb50   :  { %3192 = vmatprep.subr.mxu0 %v1266_v50 }
 0xb52   :  { %v1205_v28 = vpop.permute.xlu0 %1204 }
 0xb58   :  { %v3377_v63 = vpop.eup %3376 }
 0xb59   :  { %v1023_v3 = vmul.f32 %v3377_v63, %v3375_v56  ;;  %v3379_v35 = vpop.eup %3378  ;;  %v1242_v63 = vsub.s32 2, %v3693_v58 }
 0xb5a   :  { %v272_v36 = vadd.f32 1.0, %v3379_v35  ;;  %v1413_v35 = vld [vmem:[%s4318_s10 + $0x20] sm:$0xff] }
 0xb5b   :  { %3179 = vmatmul.mubr.msk.f32.vlgmr.msra.gmra.mxu0 %vm519_vm7, %v1023_v3  ;;  %v1248_v3 = vsub.s32 3, %v3693_v58  ;;  %v1243_v4 = vrot.slane %v3733_v23, %v1242_v63 }
 0xb5c   :  { %v276_v38 = vrot.slane %v272_v36, %v3696_v59  ;;  %v280_v39 = vrot.slane %v272_v36, %v3699_v60  ;;  %3193 = vmatpush3.msra.mxu0 %v1266_v50  ;;  %v1412_v36 = vld [vmem:[%s4318_s10 + $0x18] sm:$0xff]  ;;  %v2960_v50 = vld [vmem:[%s4310_s4 + $0xa8] sm:$0xff] }
 0xb5d   :  { %3194 = vmatprep.subr.mxu0 %v1265_v51  ;;  %v1249_v6 = vrot.slane %v3733_v23, %v1248_v3 }
 0xb5e   :  { %3195 = vmatpush3.msra.mxu0 %v1265_v51  ;;  %v2959_v51 = vld [vmem:[%s4310_s4 + $0xa0] sm:$0xff] }
 0xb5f   :  { %3196 = vmatprep.subr.mxu0 %v1264_v52 }
 0xb60   :  { %3197 = vmatpush3.msra.mxu0 %v1264_v52  ;;  %v2958_v52 = vld [vmem:[%s4310_s4 + $0x98] sm:$0xff] }
 0xc1b   :  { %v1097_v9 = vpop.f32.mrf.mxu0 }
 0xc1c   :  { %1102 = vrot.lane.b32.xlu1 %v1097_v9, %s3439_s15 }
 0xc1d   :  { %v3180_v10 = vpop.f32.mrf.mxu0 }
 0xc20   :  { %762 = vrot.lane.b32.xlu1 %v3808_v27, %s3439_s15 }
 0xc24   :  { %1206 = vrot.lane.b32.xlu1 %v3703_v1, %s3437_s25  ;;  %v1117_v1 = vrot.slane %v3733_v23, %v1116_v17 }
 0xc8e   :  { %v1103_v11 = vpop.permute.xlu1 %1102 }
 0xc8f   :  { %v1105_v12 = vsel %vm430_vm5, %v931_v46, %v1103_v11 }
 0xc90   :  { %v1107_v13 = vrot.slane %v1105_v12, 3 }
 0xc92   :  { %v763_v14 = vpop.permute.xlu1 %762 }
 0xc93   :  { %v765_v15 = vsel %vm430_vm5, %v3788_v8, %v763_v14 }
 0xc94   :  { %v1109_v16 = vsel %vm258_vm3, %v765_v15, %v1107_v13 }
 0xc95   :  { %3189 = vmatprep.mubr.msk.f32.mxu1 %vm283_vm1, %v1109_v16 }
 0xc96   :  { %3190 = vmatmul.mubr.msk.f32.vlgmr.msra.gmra.mxu1 %vm283_vm1, %v1107_v13  ;;  %v1207_v25 = vpop.permute.xlu1 %1206 }
 0xd56   :  { %v3191_v20 = vpop.f32.mrf.mxu1 }
 0xd57   :  { %v1195_v8 = vadd.f32 %v3191_v20, %v1117_v1 }
 0xd58   :  { %v1189_v21 = vpop.f32.mrf.mxu1 }
 0xd59   :  { %v1203_v22 = vmul.f32 %v1201_v19, %v1195_v8  ;;  %v1190_v24 = vadd.f32 %v1189_v21, %v1117_v1  ;;  %v1424_v8 = vld [vmem:[%s4318_s10 + $0x78] sm:$0xff]  ;;  %v1423_v21 = vld [vmem:[%s4318_s10 + $0x70] sm:$0xff] }
 0xd5a   :  { %3203 = vmatprep.subr.mxu1 %v1424_v8 }
 0xd5b   :  { %v1211_v26 = vmul.f32 %v1207_v25, %v1203_v22  ;;  %v1202_v27 = vmul.f32 %v1201_v19, %v1190_v24  ;;  %3204 = vmatpush3.msra.mxu1 %v1424_v8  ;;  %v1422_v22 = vld [vmem:[%s4318_s10 + $0x68] sm:$0xff]  ;;  %v1421_v24 = vld [vmem:[%s4318_s10 + $0x60] sm:$0xff]  ;;  %v1420_v25 = vld [vmem:[%s4318_s10 + $0x58] sm:$0xff] }
 0xd5c   :  { %3205 = vmatprep.subr.mxu1 %v1423_v21 }
 0xd5d   :  { %v1210_v29 = vmul.f32 %v1205_v28, %v1202_v27  ;;  %v3861_v30 = vadd.f32 %v1211_v26, %v3689_v53  ;;  %v281_v53 = vsel %vm258_vm3, %v276_v38, %v280_v39  ;;  %3206 = vmatpush3.msra.mxu1 %v1423_v21  ;;  %v1419_v26 = vld [vmem:[%s4318_s10 + $0x50] sm:$0xff]  ;;  %v1418_v27 = vld [vmem:[%s4318_s10 + $0x48] sm:$0xff]  ;;  %v1417_v28 = vld [vmem:[%s4318_s10 + $0x40] sm:$0xff] }
 0xd5e   :  { %3207 = vmatprep.subr.mxu1 %v1422_v22  ;;  %v1411_v38 = vld [vmem:[%s4318_s10 + $0x10] sm:$0xff] }
 0xd5f   :  { %v1217_v32 = vsel %vm287_vm2, %v3861_v30, 0.0  ;;  %v3866_v33 = vadd.f32 %v1210_v29, %v3682_v48  ;;  %3208 = vmatpush3.msra.mxu1 %v1422_v22  ;;  %v1416_v29 = vld [vmem:[%s4318_s10 + $0x38] sm:$0xff] }
 0xd60   :  { %1218 = vadd.xlane.f32.xlu1 %v1217_v32  ;;  %3209 = vmatprep.subr.mxu1 %v1421_v24  ;;  %v1415_v32 = vld [vmem:[%s4318_s10 + $0x30] sm:$0xff] }
 0xd61   :  { %v1214_v34 = vsel %vm283_vm1, %v3866_v33, 0.0  ;;  %3210 = vmatpush3.msra.mxu1 %v1421_v24 }
 0xd62   :  { %1215 = vadd.xlane.f32.xlu0 %v1214_v34  ;;  %3211 = vmatprep.subr.mxu1 %v1420_v25  ;;  %v1414_v34 = vld [vmem:[%s4318_s10 + $0x28] sm:$0xff] }
 0xd63   :  { %3212 = vmatpush3.msra.mxu1 %v1420_v25 }
 0xd64   :  { %3213 = vmatprep.subr.mxu1 %v1419_v26 }
 0xd65   :  { %3214 = vmatpush3.msra.mxu1 %v1419_v26 }
 0xd66   :  { %3215 = vmatprep.subr.mxu1 %v1418_v27 }
 0xd67   :  { %3216 = vmatpush3.msra.mxu1 %v1418_v27 }
 0xd68   :  { %3217 = vmatprep.subr.mxu1 %v1417_v28 }
 0xd69   :  { %3218 = vmatpush3.msra.mxu1 %v1417_v28 }
 0xd6a   :  { %3219 = vmatprep.subr.mxu1 %v1416_v29 }
 0xd6b   :  { %3220 = vmatpush3.msra.mxu1 %v1416_v29 }
 0xd6c   :  { %3221 = vmatprep.subr.mxu1 %v1415_v32 }
 0xd6d   :  { %3222 = vmatpush3.msra.mxu1 %v1415_v32 }
 0xd6e   :  { %3223 = vmatprep.subr.mxu1 %v1414_v34 }
 0xd6f   :  { %3224 = vmatpush3.msra.mxu1 %v1414_v34 }
 0xd70   :  { %3225 = vmatprep.subr.mxu1 %v1413_v35 }
 0xd71   :  { %1257 = vrot.lane.b32.xlu1 %v3740_v31, %s3440_s16  ;;  %3226 = vmatpush3.msra.mxu1 %v1413_v35 }
 0xd72   :  { %3227 = vmatprep.subr.mxu1 %v1412_v36 }
 0xd73   :  { %3228 = vmatpush3.msra.mxu1 %v1412_v36 }
 0xd74   :  { %3229 = vmatprep.subr.mxu1 %v1411_v38 }
 0xd75   :  { %1511 = vrot.lane.b32.xlu1 %v281_v53, %s3433_s1  ;;  %3230 = vmatpush3.msra.mxu1 %v1411_v38 }
 0xd79   :  { %1513 = vrot.lane.b32.xlu1 %v280_v39, %s3433_s1 }
 0xde9   :  { %v1219_v48 = vpop.xlane.xlu1 %1218 }
 0xdea   :  { %v1221_v40 = vmul.f32 0.03125, %v1219_v48  ;;  %v2970_v48 = vld [vmem:[%s4310_s4 + $0xf8] sm:$0xff] }
 0xdeb   :  { %v1216_v41 = vpop.xlane.xlu0 %1215 }
 0xdec   :  { %v1220_v42 = vmul.f32 0.03125, %v1216_v41  ;;  %v1223_v43 = vsub.f32 %v3861_v30, %v1221_v40  ;;  %v2969_v40 = vld [vmem:[%s4310_s4 + $0xf0] sm:$0xff]  ;;  %v2968_v41 = vld [vmem:[%s4310_s4 + $0xe8] sm:$0xff] }
 0xded   :  { %v1258_v19 = vpop.permute.xlu1 %1257 }
 0xdee   :  { %v1222_v44 = vsub.f32 %v3866_v33, %v1220_v42  ;;  %v1225_v49 = vmul.f32 %v1223_v43, %v1223_v43  ;;  %v2967_v42 = vld [vmem:[%s4310_s4 + $0xe0] sm:$0xff] }
 0xdf0   :  { %v1224_v46 = vmul.f32 %v1222_v44, %v1222_v44  ;;  %v1229_v31 = vsel %vm287_vm2, %v1225_v49, 0.0  ;;  %v2962_v49 = vld [vmem:[%s4310_s4 + $0xb8] sm:$0xff] }
 0xdf2   :  { %v1226_v47 = vsel %vm283_vm1, %v1224_v46, 0.0  ;;  %v2964_v46 = vld [vmem:[%s4310_s4 + $0xc8] sm:$0xff] }
 0xdf3   :  { %1227 = vadd.xlane.f32.xlu0 %v1226_v47  ;;  %v2963_v47 = vld [vmem:[%s4310_s4 + $0xc0] sm:$0xff] }
 0xdf7   :  { %1230 = vadd.xlane.f32.xlu0 %v1229_v31  ;;  %v2961_v31 = vld [vmem:[%s4310_s4 + $0xb0] sm:$0xff] }
 0xe0d   :  { %1255 = vrot.lane.b32.xlu0 %v3745_v37, %s3440_s16  ;;  %v1263_v37 = vld [vmem:[%s4317_s8] sm:$0xff] }
 0xe0e   :  { %3198 = vmatprep.subr.mxu0 %v1263_v37 }
 0xe0f   :  { %3199 = vmatpush3.msra.mxu0 %v1263_v37  ;;  %v2957_v37 = vld [vmem:[%s4310_s4 + $0x90] sm:$0xff] }
 0xe10   :  { %1556 = vmatprep.subr.mxu0 %v2970_v48 }
 0xe7c   :  { %v1228_v54 = vpop.xlane.xlu0 %1227 }
 0xe7d   :  { %v1232_v55 = vmul.f32 0.03125, %v1228_v54  ;;  %v2956_v54 = vld [vmem:[%s4310_s4 + $0x88] sm:$0xff] }
 0xe7f   :  { %v1234_v56 = vadd.f32 1e-06, %v1232_v55  ;;  %v2955_v55 = vld [vmem:[%s4310_s4 + $0x80] sm:$0xff] }
 0xe80   :  { %v1231_v57 = vpop.xlane.xlu0 %1230 }
 0xe81   :  { %3380 = vrsqrt.f32 %v1234_v56  ;;  %v1233_v61 = vmul.f32 0.03125, %v1231_v57  ;;  %v2951_v56 = vld [vmem:[%s4319_s9] ss:$0 sm:$0xff] }
 0xe83   :  { %v1235_v62 = vadd.f32 1e-06, %v1233_v61 }
 0xe84   :  { %v1256_v14 = vpop.permute.xlu0 %1255 }
 0xe85   :  { %3382 = vrsqrt.f32 %v1235_v62 }
 0xe8e   :  { %v3381_v5 = vpop.eup %3380 }
 0xe8f   :  { %v1238_v2 = vmul.f32 %v3381_v5, %v1222_v44  ;;  %v2965_v44 = vld [vmem:[%s4310_s4 + $0xd0] sm:$0xff] }
 0xe91   :  { %v1244_v7 = vmul.f32 %v1243_v4, %v1238_v2 }
 0xe92   :  { %v3383_v9 = vpop.eup %3382 }
 0xe93   :  { %v1239_v10 = vmul.f32 %v3383_v9, %v1223_v43  ;;  %v1250_v11 = vadd.f32 %v1249_v6, %v1244_v7  ;;  %v2966_v43 = vld [vmem:[%s4310_s4 + $0xd8] sm:$0xff] }
 0xe95   :  { %v1245_v12 = vmul.f32 %v1243_v4, %v1239_v10  ;;  %v1252_v13 = vmul.f32 %v1250_v11, %v281_v53  ;;  %v1409_v53 = vld [vmem:[%s4318_s10] sm:$0xff] }
 0xe97   :  { %v1251_v15 = vadd.f32 %v1249_v6, %v1245_v12  ;;  %v1261_v16 = vadd.f32 %v1256_v14, %v1252_v13 }
 0xe99   :  { %v1253_v1 = vmul.f32 %v1251_v15, %v280_v39  ;;  %3200 = vmatprep.mubr.msk.f32.mxu0 %vm283_vm1, %v1261_v16  ;;  %v1410_v39 = vld [vmem:[%s4318_s10 + $0x8] sm:$0xff] }
 0xe9a   :  { %3231 = vmatprep.subr.mxu1 %v1410_v39 }
 0xe9b   :  { %v1262_v20 = vadd.f32 %v1258_v19, %v1253_v1  ;;  %3232 = vmatpush3.msra.mxu1 %v1410_v39 }
 0xe9c   :  { %3233 = vmatprep.subr.mxu1 %v1409_v53 }
 0xe9d   :  { %3201 = vmatmul.mubr.msk.f32.vlgmr.msra.gmra.mxu0 %vm283_vm1, %v1262_v20  ;;  %3234 = vmatpush3.msra.mxu1 %v1409_v53 }
 0xe9e   :  { %1604 = vmatprep.mubr.f32.mxu0 %v3432_v0  ;;  %3259 = vmatprep.subr.mxu1 %v3432_v0 }
 0xe9f   :  { %1557 = vmatpush1.msra.mxu0 %v2969_v40 }
 0xea0   :  { %1558 = vmatprep.subr.mxu0 %v2968_v41 }
 0xea1   :  { %1559 = vmatpush1.msra.mxu0 %v2967_v42 }
 0xea2   :  { %1560 = vmatprep.subr.mxu0 %v2966_v43 }
 0xea3   :  { %1561 = vmatpush1.msra.mxu0 %v2965_v44 }
 0xea4   :  { %1562 = vmatprep.subr.mxu0 %v2964_v46  ;;  %v3441_v46 = vmov -1.0  }
 0xea5   :  { %1563 = vmatpush1.msra.mxu0 %v2963_v47 }
 0xea6   :  { %1564 = vmatprep.subr.mxu0 %v2962_v49 }
 0xea7   :  { %1565 = vmatpush1.msra.mxu0 %v2961_v31 }
 0xea8   :  { %1566 = vmatprep.subr.mxu0 %v2960_v50 }
 0xea9   :  { %1567 = vmatpush1.msra.mxu0 %v2959_v51 }
 0xeaa   :  { %1568 = vmatprep.subr.mxu0 %v2958_v52 }
 0xeab   :  { %1569 = vmatpush1.msra.mxu0 %v2957_v37 }
 0xeac   :  { %1570 = vmatprep.subr.mxu0 %v2956_v54 }
 0xead   :  { %1571 = vmatpush1.msra.mxu0 %v2955_v55 }
 0xeae   :  { %2971 = vmatmul.mubr.msk.f32.vlgmr.msra.gmra.mxu0 %vm74_vm0, %v3674_v45 }
 0xf5d   :  { %v3202_v57 = vpop.f32.mrf.mxu0 }
 0xf5e   :  { %v1352_v61 = vadd.f32 %v3202_v57, %v2951_v56 }
 0xf5f   :  { %v1346_v62 = vpop.f32.mrf.mxu0 }
 0xf60   :  { %v1358_v4 = vmul.f32 0.70710677, %v1352_v61  ;;  %v1347_v5 = vadd.f32 %v2951_v56, %v1346_v62  ;;  %v1356_v56 = vmul.f32 0.5, %v1352_v61 }
 0xf62   :  { %v1364_v2 = vand.u32 2147483647, %v1358_v4  ;;  %v1357_v6 = vmul.f32 0.70710677, %v1347_v5  ;;  %vm1360_vm9 = vcmp.ge.f32.partialorder %v1358_v4, 0.0  ;;  %v1355_v54 = vmul.f32 0.5, %v1347_v5 }
 0xf63   :  { %v1362_v47 = vsel %vm1360_vm9, 1.0, %v3441_v46  ;;  %v1427_v4 = vsub.s32 6, %v3693_v58 }
 0xf64   :  { %v1366_v7 = vmul.f32 0.3275911, %v1364_v2  ;;  %v1363_v9 = vand.u32 2147483647, %v1357_v6  ;;  %v1392_v13 = vsub.f32 0.0, %v1364_v2  ;;  %vm1359_vm10 = vcmp.ge.f32.partialorder %v1357_v6, 0.0 }
 0xf65   :  { %v1361_v51 = vsel %vm1359_vm10, 1.0, %v3441_v46  ;;  %v1428_v6 = vrot.slane %v3733_v23, %v1427_v4 }
 0xf66   :  { %v1368_v10 = vadd.f32 1.0, %v1366_v7  ;;  %v1365_v11 = vmul.f32 0.3275911, %v1363_v9  ;;  %v1391_v45 = vsub.f32 0.0, %v1363_v9  ;;  %v1394_v14 = vmul.f32 %v1392_v13, %v1364_v2  ;;  %v1512_v7 = vpop.permute.xlu1 %1511 }
 0xf67   :  { %v1506_v2 = vsub.s32 7, %v3693_v58 }
 0xf68   :  { %3384 = vrcp.f32 %v1368_v10  ;;  %v1367_v12 = vadd.f32 1.0, %v1365_v11  ;;  %v1393_v16 = vmul.f32 %v1391_v45, %v1363_v9  ;;  %v1397_v19 = vmul.f32 1.442695, %v1394_v14 }
 0xf69   :  { %v1507_v61 = vrot.slane %v3733_v23, %v1506_v2 }
 0xf6a   :  { %3386 = vrcp.f32 %v1367_v12  ;;  %v1395_v21 = vmul.f32 1.442695, %v1393_v16  ;;  %v1514_v13 = vpop.permute.xlu1 %1513 }
 0xf6b   :  { %3388 = vpow2.f32 %v1397_v19 }
 0xf6c   :  { %3390 = vpow2.f32 %v1395_v21 }
 0xf75   :  { %v3385_v15 = vpop.eup %3384 }
 0xf76   :  { %v1374_v1 = vmul.f32 1.0614054, %v3385_v15 }
 0xf77   :  { %v3387_v20 = vpop.eup %3386 }
 0xf78   :  { %v1376_v8 = vadd.f32 -1.4531521, %v1374_v1  ;;  %v1373_v22 = vmul.f32 1.0614054, %v3387_v20  ;;  %v3389_v48 = vpop.eup %3388 }
 0xf79   :  { %v3391_v43 = vpop.eup %3390 }
 0xf7a   :  { %v1378_v24 = vmul.f32 %v3385_v15, %v1376_v8  ;;  %v1375_v25 = vadd.f32 -1.4531521, %v1373_v22 }
 0xf7c   :  { %v1380_v26 = vadd.f32 1.4214138, %v1378_v24  ;;  %v1377_v27 = vmul.f32 %v3387_v20, %v1375_v25 }
 0xf7e   :  { %v1382_v28 = vmul.f32 %v3385_v15, %v1380_v26  ;;  %v1379_v29 = vadd.f32 1.4214138, %v1377_v27 }
 0xf80   :  { %v1384_v32 = vadd.f32 -0.28449672, %v1382_v28  ;;  %v1381_v34 = vmul.f32 %v3387_v20, %v1379_v29 }
 0xf82   :  { %v1386_v35 = vmul.f32 %v3385_v15, %v1384_v32  ;;  %v1383_v36 = vadd.f32 -0.28449672, %v1381_v34 }
 0xf84   :  { %v1388_v38 = vadd.f32 0.2548296, %v1386_v35  ;;  %v1385_v39 = vmul.f32 %v3387_v20, %v1383_v36 }
 0xf86   :  { %v1390_v53 = vmul.f32 %v3385_v15, %v1388_v38  ;;  %v1387_v40 = vadd.f32 0.2548296, %v1385_v39  ;;  %v2975_v38 = vld [vmem:[%s4313_s5 + $0x38] sm:$0xff]  ;;  %v2974_v39 = vld [vmem:[%s4313_s5 + $0x30] sm:$0xff] }
 0xf87   :  { %3238 = vmatprep.subr.mxu0 %v2975_v38 }
 0xf88   :  { %v1400_v41 = vmul.f32 %v3389_v48, %v1390_v53  ;;  %v1389_v42 = vmul.f32 %v3387_v20, %v1387_v40  ;;  %v1606_v20 = vpop.f32.mrf.mxu0  ;;  %3239 = vmatpush3.msra.mxu0 %v2975_v38  ;;  %v2973_v53 = vld [vmem:[%s4313_s5 + $0x28] sm:$0xff]  ;;  %v2972_v48 = vld [vmem:[%s4313_s5 + $0x20] sm:$0xff] }
 0xf89   :  { %3392 = vtanh.f32 %v1606_v20  ;;  %3240 = vmatprep.subr.mxu0 %v2974_v39 }
 0xf8a   :  { %v1402_v44 = vsub.f32 1.0, %v1400_v41  ;;  %v1399_v49 = vmul.f32 %v3391_v43, %v1389_v42  ;;  %3241 = vmatpush3.msra.mxu0 %v2974_v39 }
 0xf8b   :  { %3242 = vmatprep.subr.mxu0 %v2973_v53 }
 0xf8c   :  { %v1404_v31 = vmul.f32 %v1402_v44, %v1362_v47  ;;  %v1401_v50 = vsub.f32 1.0, %v1399_v49  ;;  %3243 = vmatpush3.msra.mxu0 %v2973_v53  ;;  %v4062_v49 = vld [vmem:[%s4314_s11 + $0x8] sm:$0xff] }
 0xf8d   :  { %3244 = vmatprep.subr.mxu0 %v2972_v48 }
 0xf8e   :  { %v1403_v52 = vmul.f32 %v1401_v50, %v1361_v51  ;;  %v1406_v37 = vadd.f32 1.0, %v1404_v31  ;;  %3245 = vmatpush3.msra.mxu0 %v2972_v48  ;;  %v1674_v31 = vrot.slane %v4062_v49, %v3696_v59 }
 0xf8f   :  { %3249 = vmatprep.subr.mxu0 %v3432_v0 }
 0xf90   :  { %v1405_v55 = vadd.f32 1.0, %v1403_v52  ;;  %v1408_v62 = vmul.f32 %v1406_v37, %v1356_v56  ;;  %v1680_v52 = vrot.slane %v4062_v49, %v3699_v60 }
 0xf92   :  { %v1407_v57 = vmul.f32 %v1405_v55, %v1355_v54 }
 0xf94   :  { %3235 = vmatprep.mubr.f32.mxu1 %v1407_v57 }
 0xf95   :  { %3236 = vmatmul.mubr.f32.vlgmr.msra.gmra.mxu1 %v1408_v62 }
 0xf96   :  { %3261 = vmatprep.mubr.msk.f32.mxu1 %vm3434_vm4, %v3432_v0  ;;  %v3393_v8 = vpop.eup %3392 }
 0xf97   :  { %v1622_v21 = vadd.f32 1.0, %v3393_v8  ;;  %v1616_v55 = vrot.slane %v3393_v8, %v3696_v59  ;;  %v4070_v56 = vrot.slane %v3393_v8, %v3699_v60 }
 0xf99   :  { %v4031_v22 = vrot.slane %v1622_v21, %v3699_v60  ;;  %v1626_v35 = vrot.slane %v1622_v21, %v3696_v59 }
 0xf9b   :  { %v4042_v36 = vsel %vm258_vm3, %v1626_v35, %v4031_v22 }
0x1055   :  { %v3237_v5 = vpop.f32.mrf.mxu1 }
0x1056   :  { %v1501_v9 = vadd.f32 %v3237_v5, %v1428_v6  ;;  %v4074_v5 = vsel %vm258_vm3, %v1616_v55, %v4070_v56 }
0x1057   :  { %v1495_v10 = vpop.f32.mrf.mxu1 }
0x1058   :  { %v1509_v11 = vmul.f32 %v1507_v61, %v1501_v9  ;;  %v1496_v12 = vadd.f32 %v1495_v10, %v1428_v6 }
0x105a   :  { %v1518_v45 = vmul.f32 %v1514_v13, %v1509_v11  ;;  %v1508_v14 = vmul.f32 %v1507_v61, %v1496_v12 }
0x105c   :  { %v1517_v15 = vmul.f32 %v1512_v7, %v1508_v14  ;;  %v4021_v16 = vadd.f32 %v1518_v45, %v3861_v30  ;;  %v4082_v45 = vpop.f32.mrf.mxu0  ;;  %v2977_v14 = vld [vmem:[%s4315_s6 + $0x1] ss:$0 sm:$0xff] }
0x105e   :  { %v1648_v1 = vsel %vm287_vm2, %v4021_v16, 0.0  ;;  %v4026_v19 = vadd.f32 %v1517_v15, %v3866_v33 }
0x105f   :  { %1649 = vadd.xlane.f32.xlu1 %v1648_v1 }
0x1060   :  { %v1645_v23 = vsel %vm283_vm1, %v4026_v19, 0.0 }
0x1061   :  { %1646 = vadd.xlane.f32.xlu0 %v1645_v23 }
0x1070   :  { %1686 = vrot.lane.b32.xlu1 %v4031_v22, %s3433_s1 }
0x10e8   :  { %v1650_v30 = vpop.xlane.xlu1 %1649 }
0x10e9   :  { %v1652_v24 = vmul.f32 0.03125, %v1650_v30 }
0x10ea   :  { %v1647_v25 = vpop.xlane.xlu0 %1646 }
0x10eb   :  { %v1651_v33 = vmul.f32 0.03125, %v1647_v25  ;;  %v1654_v26 = vsub.f32 %v4021_v16, %v1652_v24 }
0x10ec   :  { %v1687_v11 = vpop.permute.xlu1 %1686 }
0x10ed   :  { %v1653_v27 = vsub.f32 %v4026_v19, %v1651_v33  ;;  %v1656_v32 = vmul.f32 %v1654_v26, %v1654_v26 }
0x10ef   :  { %v1655_v28 = vmul.f32 %v1653_v27, %v1653_v27  ;;  %v1660_v34 = vsel %vm287_vm2, %v1656_v32, 0.0 }
0x10f1   :  { %v1657_v29 = vsel %vm283_vm1, %v1655_v28, 0.0 }
0x10f2   :  { %1658 = vadd.xlane.f32.xlu0 %v1657_v29 }
0x10f6   :  { %1661 = vadd.xlane.f32.xlu0 %v1660_v34 }
0x110c   :  { %1684 = vrot.lane.b32.xlu0 %v4042_v36, %s3433_s1 }
0x117b   :  { %v1659_v40 = vpop.xlane.xlu0 %1658 }
0x117c   :  { %v1663_v41 = vmul.f32 0.03125, %v1659_v40 }
0x117e   :  { %v1665_v42 = vadd.f32 1e-06, %v1663_v41 }
0x117f   :  { %v1662_v43 = vpop.xlane.xlu0 %1661 }
0x1180   :  { %3394 = vrsqrt.f32 %v1665_v42  ;;  %v1664_v44 = vmul.f32 0.03125, %v1662_v43 }
0x1182   :  { %v1666_v47 = vadd.f32 1e-06, %v1664_v44 }
0x1183   :  { %v1685_v57 = vpop.permute.xlu0 %1684 }
0x1184   :  { %3396 = vrsqrt.f32 %v1666_v47 }
0x118d   :  { %v3395_v50 = vpop.eup %3394 }
0x118e   :  { %v1669_v51 = vmul.f32 %v3395_v50, %v1653_v27 }
0x1190   :  { %v1675_v37 = vmul.f32 %v1674_v31, %v1669_v51 }
0x1191   :  { %v3397_v54 = vpop.eup %3396 }
0x1192   :  { %v1681_v62 = vadd.f32 %v1680_v52, %v1675_v37  ;;  %v1670_v6 = vmul.f32 %v3397_v54, %v1654_v26 }
0x1194   :  { %v1690_v7 = vmul.f32 %v1685_v57, %v1681_v62  ;;  %v1676_v61 = vmul.f32 %v1674_v31, %v1670_v6 }
0x1196   :  { %v1692_v9 = vadd.f32 %v1690_v7, %v4074_v5  ;;  %v1682_v10 = vadd.f32 %v1680_v52, %v1676_v61 }
0x1198   :  { %v1691_v12 = vmul.f32 %v1687_v11, %v1682_v10  ;;  %3246 = vmatprep.mubr.msk.f32.mxu0 %vm283_vm1, %v1692_v9 }
0x119a   :  { %v1693_v13 = vadd.f32 %v1691_v12, %v4070_v56 }
0x119c   :  { %3247 = vmatmul.mubr.msk.f32.vlgmr.msra.gmra.mxu0 %vm283_vm1, %v1693_v13 }
0x119d   :  { %3251 = vmatprep.mubr.msk.f32.mxu0 %vm3434_vm4, %v3432_v0 }
0x125c   :  { %v3248_v15 = vpop.f32.mrf.mxu0 }
0x125d   :  { %v1785_v1 = vadd.f32 %v3248_v15, %v2977_v14 }
0x125e   :  { %v1779_v23 = vpop.f32.mrf.mxu0 }
0x125f   :  { %v4087_v20 = vadd.f32 %v2977_v14, %v1779_v23  ;;  %v2126_v8 = vrot.slane %v1785_v1, 5 }
0x1261   :  { %1953 = vrot.lane.b32.xlu0 %v4087_v20, %s3436_s24  ;;  %1789 = vrot.lane.b32.xlu1 %v4087_v20, %s3433_s1  ;;  %v2125_v21 = vrot.slane %v4087_v20, 5 }
0x1263   :  { %v4095_v30 = vsel %vm767_vm8, %v2125_v21, %v2126_v8 }
0x1265   :  { %1955 = vrot.lane.b32.xlu1 %v4087_v20, %s3435_s23  ;;  %2294 = vrot.lane.b32.xlu0 %v4095_v30, %s3435_s23 }
0x1269   :  { %2128 = vrot.lane.b32.xlu1 %v4095_v30, %s3433_s1 }
0x126d   :  { %2292 = vrot.lane.b32.xlu1 %v4095_v30, %s3436_s24 }
0x12d3   :  { %v1790_v24 = vpop.permute.xlu1 %1789  ;;  %v1954_v33 = vpop.permute.xlu0 %1953 }
0x12d4   :  { %3250 = vmatpush3.xpose.msk.msra.mxu0 %vm430_vm5, %v1790_v24 }
0x12d5   :  { %3254 = vmatprep.subr.mxu0 %v3432_v0 }
0x12d7   :  { %3252 = vmatmul.mubr.msk.f32.vlgmr.msra.gmra.mxu0 %vm430_vm5, %v4087_v20  ;;  %v1956_v25 = vpop.permute.xlu1 %1955  ;;  %v2295_v27 = vpop.permute.xlu0 %2294 }
0x12d8   :  { %3260 = vmatpush3.xpose.msk.msra.mxu1 %vm430_vm5, %v1956_v25  ;;  %3256 = vmatprep.mubr.msk.f32.mxu0 %vm3434_vm4, %v3432_v0 }
0x12d9   :  { %3269 = vmatprep.subr.mxu1 %v3432_v0 }
0x12db   :  { %3262 = vmatmul.mubr.msk.f32.vlgmr.msra.gmra.mxu1 %vm430_vm5, %v1954_v33  ;;  %v2129_v26 = vpop.permute.xlu1 %2128 }
0x12dc   :  { %3270 = vmatpush3.xpose.msk.msra.mxu1 %vm430_vm5, %v2129_v26  ;;  %3271 = vmatprep.mubr.msk.f32.mxu1 %vm3434_vm4, %v3432_v0 }
0x12dd   :  { %3279 = vmatprep.subr.mxu1 %v3432_v0 }
0x12df   :  { %3272 = vmatmul.mubr.msk.f32.vlgmr.msra.gmra.mxu1 %vm430_vm5, %v4095_v30  ;;  %v2293_v28 = vpop.permute.xlu1 %2292 }
0x12e0   :  { %3280 = vmatpush3.xpose.msk.msra.mxu1 %vm430_vm5, %v2295_v27  ;;  %3281 = vmatprep.mubr.msk.f32.mxu1 %vm3434_vm4, %v3432_v0 }
0x12e3   :  { %3282 = vmatmul.mubr.msk.f32.vlgmr.msra.gmra.mxu1 %vm430_vm5, %v2293_v28 }
0x1397   :  { %v1861_v29 = vpop.f32.mrf.mxu0 }
0x1398   :  { %v1865_v32 = vsel %vm505_vm6, %v1861_v29, -inf }
0x1399   :  { %v3253_v34 = vpop.f32.mrf.mxu0  ;;  %1866 = vmax.xlane.f32.xlu0 %v1865_v32 }
0x139b   :  { %v2027_v35 = vpop.f32.mrf.mxu1 }
0x139c   :  { %v2031_v38 = vsel %vm505_vm6, %v2027_v35, -inf }
0x139d   :  { %v3263_v39 = vpop.f32.mrf.mxu1  ;;  %2032 = vmax.xlane.f32.xlu1 %v2031_v38  ;;  %v2998_v38 = vld [vmem:[%s4316_s7 + $0x30] sm:$0xff] }
0x139f   :  { %v2200_v53 = vpop.f32.mrf.mxu1 }
0x13a0   :  { %v2204_v48 = vsel %vm505_vm6, %v2200_v53, -inf }
0x13a1   :  { %2205 = vmax.xlane.f32.xlu0 %v2204_v48  ;;  %v3273_v40 = vpop.f32.mrf.mxu1 }
0x13a3   :  { %v2366_v41 = vpop.f32.mrf.mxu1 }
0x13a4   :  { %v2370_v42 = vsel %vm505_vm6, %v2366_v41, -inf }
0x13a5   :  { %2371 = vmax.xlane.f32.xlu0 %v2370_v42  ;;  %v3283_v43 = vpop.f32.mrf.mxu1  ;;  %v2997_v42 = vld [vmem:[%s4316_s7 + $0x28] sm:$0xff] }
0x13a6   :  { %v2996_v43 = vld [vmem:[%s4316_s7 + $0x20] sm:$0xff] }
0x1422   :  { %v1867_v44 = vpop.xlane.xlu0 %1866 }
0x1423   :  { %v1868_v47 = vsub.f32 %v1861_v29, %v1867_v44 }
0x1425   :  { %v1869_v31 = vmul.f32 1.442695, %v1868_v47 }
0x1426   :  { %v2033_v50 = vpop.xlane.xlu1 %2032 }
0x1427   :  { %3398 = vpow2.f32 %v1869_v31  ;;  %v2034_v51 = vsub.f32 %v2027_v35, %v2033_v50  ;;  %v2999_v35 = vld [vmem:[%s4316_s7 + $0x38] sm:$0xff] }
0x1428   :  { %3289 = vmatprep.subr.mxu1 %v2999_v35 }
0x1429   :  { %v2035_v52 = vmul.f32 1.442695, %v2034_v51  ;;  %3290 = vmatpush3.msra.mxu1 %v2999_v35 }
0x142a   :  { %v2206_v37 = vpop.xlane.xlu0 %2205  ;;  %3291 = vmatprep.subr.mxu1 %v2998_v38 }
0x142b   :  { %3400 = vpow2.f32 %v2035_v52  ;;  %v2207_v54 = vsub.f32 %v2200_v53, %v2206_v37  ;;  %3292 = vmatpush3.msra.mxu1 %v2998_v38 }
0x142c   :  { %3293 = vmatprep.subr.mxu1 %v2997_v42 }
0x142d   :  { %v2208_v55 = vmul.f32 1.442695, %v2207_v54  ;;  %3294 = vmatpush3.msra.mxu1 %v2997_v42  ;;  %v2475_v54 = vrot.slane %v4062_v49, %v1116_v17 }
0x142e   :  { %v2372_v10 = vpop.xlane.xlu0 %2371  ;;  %3295 = vmatprep.subr.mxu1 %v2996_v43 }
0x142f   :  { %3402 = vpow2.f32 %v2208_v55  ;;  %v2373_v11 = vsub.f32 %v2366_v41, %v2372_v10  ;;  %3296 = vmatpush3.msra.mxu1 %v2996_v43 }
0x1431   :  { %v2374_v12 = vmul.f32 1.442695, %v2373_v11 }
0x1433   :  { %3404 = vpow2.f32 %v2374_v12 }
0x1434   :  { %v3399_v57 = vpop.eup %3398 }
0x1435   :  { %v1871_v62 = vsel %vm505_vm6, %v3399_v57, 0.0 }
0x1436   :  { %1872 = vadd.xlane.f32.xlu0 %v1871_v62 }
0x1438   :  { %v3401_v6 = vpop.eup %3400 }
0x1439   :  { %v2037_v7 = vsel %vm505_vm6, %v3401_v6, 0.0 }
0x143a   :  { %2038 = vadd.xlane.f32.xlu1 %v2037_v7 }
0x143c   :  { %v3403_v61 = vpop.eup %3402 }
0x143d   :  { %v2210_v9 = vsel %vm505_vm6, %v3403_v61, 0.0 }
0x143e   :  { %2211 = vadd.xlane.f32.xlu0 %v2210_v9 }
0x1440   :  { %v3405_v13 = vpop.eup %3404 }
0x1441   :  { %v2376_v14 = vsel %vm505_vm6, %v3405_v13, 0.0 }
0x144b   :  { %2042 = vrot.lane.b32.xlu1 %v4087_v20, %s3438_s26 }
0x144f   :  { %2215 = vrot.lane.b32.xlu1 %v4095_v30, %s3437_s25 }
0x1454   :  { %1876 = vrot.lane.b32.xlu0 %v4087_v20, %s3437_s25 }
0x1473   :  { %2377 = vadd.xlane.f32.xlu1 %v2376_v14 }
0x1484   :  { %2381 = vrot.lane.b32.xlu1 %v4095_v30, %s3438_s26 }
0x14bf   :  { %v1873_v15 = vpop.xlane.xlu0 %1872 }
0x14c0   :  { %3406 = vrcp.f32 %v1873_v15 }
0x14c3   :  { %v2039_v1 = vpop.xlane.xlu1 %2038 }
0x14c4   :  { %3408 = vrcp.f32 %v2039_v1 }
0x14c7   :  { %v2212_v23 = vpop.xlane.xlu0 %2211  ;;  %v2043_v21 = vpop.permute.xlu1 %2042 }
0x14c8   :  { %3410 = vrcp.f32 %v2212_v23 }
0x14cb   :  { %v1877_v8 = vpop.permute.xlu0 %1876  ;;  %v2216_v33 = vpop.permute.xlu1 %2215 }
0x14cc   :  { %3255 = vmatpush3.msk.msra.mxu0 %vm258_vm3, %v1877_v8 }
0x14cd   :  { %v3407_v20 = vpop.eup %3406  ;;  %3264 = vmatprep.subr.mxu0 %v3432_v0 }
0x14ce   :  { %v1875_v24 = vmul.f32 %v3407_v20, %v3399_v57 }
0x14d0   :  { %3257 = vmatmul.mubr.msk.f32.vlgmr.msra.gmra.mxu0 %vm519_vm7, %v1875_v24 }
0x14d1   :  { %v3409_v25 = vpop.eup %3408  ;;  %3265 = vmatpush3.msk.msra.mxu0 %vm258_vm3, %v2043_v21  ;;  %3266 = vmatprep.mubr.msk.f32.mxu0 %vm3434_vm4, %v3432_v0 }
0x14d2   :  { %3274 = vmatprep.subr.mxu0 %v3432_v0  ;;  %v2041_v30 = vmul.f32 %v3409_v25, %v3401_v6 }
0x14d4   :  { %3267 = vmatmul.mubr.msk.f32.vlgmr.msra.gmra.mxu0 %vm519_vm7, %v2041_v30 }
0x14d5   :  { %v3411_v26 = vpop.eup %3410  ;;  %3275 = vmatpush3.msk.msra.mxu0 %vm258_vm3, %v2216_v33  ;;  %3276 = vmatprep.mubr.msk.f32.mxu0 %vm3434_vm4, %v3432_v0 }
0x14d6   :  { %v2214_v27 = vmul.f32 %v3411_v26, %v3403_v61  ;;  %3284 = vmatprep.subr.mxu0 %v3432_v0 }
0x14d8   :  { %3277 = vmatmul.mubr.msk.f32.vlgmr.msra.gmra.mxu0 %vm519_vm7, %v2214_v27  ;;  %v3005_v27 = vld [vmem:[%s4317_s8 + $0x38] sm:$0xff] }
0x14d9   :  { %3286 = vmatprep.mubr.msk.f32.mxu0 %vm3434_vm4, %v3432_v0 }
0x14fc   :  { %v2378_v28 = vpop.xlane.xlu1 %2377 }
0x14fd   :  { %3412 = vrcp.f32 %v2378_v28  ;;  %v3004_v28 = vld [vmem:[%s4317_s8 + $0x30] sm:$0xff] }
0x14fe   :  { %3414 = vtanh.f32 %v4082_v45 }
0x1500   :  { %v2382_v29 = vpop.permute.xlu1 %2381 }
0x1501   :  { %3285 = vmatpush3.msk.msra.mxu0 %vm258_vm3, %v2382_v29  ;;  %v3003_v29 = vld [vmem:[%s4317_s8 + $0x28] sm:$0xff] }
0x1502   :  { %3300 = vmatprep.subr.mxu0 %v3005_v27 }
0x150a   :  { %v3413_v32 = vpop.eup %3412 }
0x150b   :  { %v2380_v34 = vmul.f32 %v3413_v32, %v3405_v13  ;;  %v3415_v15 = vpop.eup %3414 }
0x150c   :  { %v1634_v1 = vadd.f32 1.0, %v3415_v15  ;;  %v3011_v15 = vld [vmem:[%s4318_s10 + $0x88] sm:$0xff] }
0x150d   :  { %3287 = vmatmul.mubr.msk.f32.vlgmr.msra.gmra.mxu0 %vm519_vm7, %v2380_v34 }
0x150e   :  { %v1638_v45 = vrot.slane %v1634_v1, %v3696_v59  ;;  %v1642_v23 = vrot.slane %v1634_v1, %v3699_v60  ;;  %3301 = vmatpush3.msra.mxu0 %v3005_v27  ;;  %v3010_v1 = vld [vmem:[%s4318_s10 + $0x80] sm:$0xff] }
0x150f   :  { %3302 = vmatprep.subr.mxu0 %v3004_v28 }
0x1510   :  { %3303 = vmatpush3.msra.mxu0 %v3004_v28 }
0x1511   :  { %3304 = vmatprep.subr.mxu0 %v3003_v29 }
0x1512   :  { %3305 = vmatpush3.msra.mxu0 %v3003_v29 }
0x1590   :  { %v1949_v0 = vpop.f32.mrf.mxu0 }
0x1592   :  { %v3258_v39 = vpop.f32.mrf.mxu0 }
0x1594   :  { %v2115_v53 = vpop.f32.mrf.mxu0 }
0x1595   :  { %2120 = vrot.lane.b32.xlu1 %v2115_v53, %s3439_s15  ;;  %v2601_v53 = vrot.slane %v4062_v49, %v1242_v63 }
0x1596   :  { %v3268_v48 = vpop.f32.mrf.mxu0 }
0x1598   :  { %v2288_v40 = vpop.f32.mrf.mxu0 }
0x1599   :  { %2564 = vrot.lane.b32.xlu1 %v4031_v22, %s3437_s25 }
0x159a   :  { %v3278_v41 = vpop.f32.mrf.mxu0 }
0x159b   :  { %v2607_v41 = vrot.slane %v4062_v49, %v1248_v3  ;;  %v3025_v3 = vld [vmem:[%s4318_s10 + $0xf8] sm:$0xff] }
0x159c   :  { %3311 = vmatprep.subr.mxu1 %v3025_v3 }
0x15cd   :  { %v2454_v44 = vpop.f32.mrf.mxu0 }
0x15ce   :  { %2459 = vrot.lane.b32.xlu0 %v2454_v44, %s3439_s15 }
0x15cf   :  { %v3288_v47 = vpop.f32.mrf.mxu0 }
0x15d2   :  { %2562 = vrot.lane.b32.xlu0 %v4042_v36, %s3437_s25  ;;  %v2559_v36 = vrot.slane %v4062_v49, %v1200_v18 }
0x1607   :  { %v2121_v22 = vpop.permute.xlu1 %2120 }
0x1608   :  { %v2123_v52 = vsel %vm430_vm5, %v1949_v0, %v2121_v22 }
0x160b   :  { %v2565_v61 = vpop.permute.xlu1 %2564 }
0x1640   :  { %v2460_v31 = vpop.permute.xlu0 %2459 }
0x1641   :  { %v2462_v50 = vsel %vm430_vm5, %v2288_v40, %v2460_v31 }
0x1642   :  { %v2464_v51 = vrot.slane %v2462_v50, 3 }
0x1644   :  { %v2466_v37 = vsel %vm258_vm3, %v2123_v52, %v2464_v51  ;;  %v2563_v11 = vpop.permute.xlu0 %2562 }
0x1645   :  { %3297 = vmatprep.mubr.msk.f32.mxu1 %vm283_vm1, %v2466_v37 }
0x1646   :  { %3298 = vmatmul.mubr.msk.f32.vlgmr.msra.gmra.mxu1 %vm283_vm1, %v2464_v51 }
0x1647   :  { %3312 = vmatpush3.msra.mxu1 %v3025_v3 }
0x1706   :  { %v3299_v55 = vpop.f32.mrf.mxu1 }
0x1707   :  { %v2553_v57 = vadd.f32 %v3299_v55, %v2475_v54  ;;  %v3023_v55 = vld [vmem:[%s4318_s10 + $0xe8] sm:$0xff] }
0x1708   :  { %v2547_v62 = vpop.f32.mrf.mxu1 }
0x1709   :  { %v2561_v6 = vmul.f32 %v2559_v36, %v2553_v57  ;;  %v2548_v7 = vadd.f32 %v2547_v62, %v2475_v54  ;;  %v3022_v57 = vld [vmem:[%s4318_s10 + $0xe0] sm:$0xff]  ;;  %v3021_v62 = vld [vmem:[%s4318_s10 + $0xd8] sm:$0xff] }
0x170b   :  { %v2569_v9 = vmul.f32 %v2565_v61, %v2561_v6  ;;  %v2560_v10 = vmul.f32 %v2559_v36, %v2548_v7  ;;  %v3024_v36 = vld [vmem:[%s4318_s10 + $0xf0] sm:$0xff]  ;;  %v3019_v7 = vld [vmem:[%s4318_s10 + $0xc8] sm:$0xff]  ;;  %v3018_v61 = vld [vmem:[%s4318_s10 + $0xc0] sm:$0xff] }
0x170c   :  { %3313 = vmatprep.subr.mxu1 %v3024_v36  ;;  %v3020_v6 = vld [vmem:[%s4318_s10 + $0xd0] sm:$0xff] }
0x170d   :  { %v2568_v12 = vmul.f32 %v2563_v11, %v2560_v10  ;;  %v4188_v13 = vadd.f32 %v2569_v9, %v4021_v16  ;;  %v1643_v16 = vsel %vm258_vm3, %v1638_v45, %v1642_v23  ;;  %3314 = vmatpush3.msra.mxu1 %v3024_v36  ;;  %v3017_v9 = vld [vmem:[%s4318_s10 + $0xb8] sm:$0xff]  ;;  %v3016_v10 = vld [vmem:[%s4318_s10 + $0xb0] sm:$0xff]  ;;  %v3015_v11 = vld [vmem:[%s4318_s10 + $0xa8] sm:$0xff] }
0x170e   :  { %3315 = vmatprep.subr.mxu1 %v3023_v55  ;;  %v3007_v45 = vld [vmem:[%s4319_s9 + $0x1] ss:$0 sm:$0xff] }
0x170f   :  { %v2575_v17 = vsel %vm287_vm2, %v4188_v13, 0.0  ;;  %v4193_v18 = vadd.f32 %v2568_v12, %v4026_v19  ;;  %3316 = vmatpush3.msra.mxu1 %v3023_v55  ;;  %v3014_v12 = vld [vmem:[%s4318_s10 + $0xa0] sm:$0xff] }
0x1710   :  { %2576 = vadd.xlane.f32.xlu1 %v2575_v17  ;;  %3317 = vmatprep.subr.mxu1 %v3022_v57  ;;  %v3013_v17 = vld [vmem:[%s4318_s10 + $0x98] sm:$0xff] }
0x1711   :  { %v2572_v14 = vsel %vm283_vm1, %v4193_v18, 0.0  ;;  %3318 = vmatpush3.msra.mxu1 %v3022_v57 }
0x1712   :  { %2573 = vadd.xlane.f32.xlu0 %v2572_v14  ;;  %3319 = vmatprep.subr.mxu1 %v3021_v62  ;;  %v3012_v14 = vld [vmem:[%s4318_s10 + $0x90] sm:$0xff] }
0x1713   :  { %3320 = vmatpush3.msra.mxu1 %v3021_v62 }
0x1714   :  { %3321 = vmatprep.subr.mxu1 %v3020_v6 }
0x1715   :  { %3322 = vmatpush3.msra.mxu1 %v3020_v6 }
0x1716   :  { %3323 = vmatprep.subr.mxu1 %v3019_v7 }
0x1717   :  { %3324 = vmatpush3.msra.mxu1 %v3019_v7 }
0x1718   :  { %3325 = vmatprep.subr.mxu1 %v3018_v61 }
0x1719   :  { %3326 = vmatpush3.msra.mxu1 %v3018_v61 }
0x171a   :  { %3327 = vmatprep.subr.mxu1 %v3017_v9 }
0x171b   :  { %3328 = vmatpush3.msra.mxu1 %v3017_v9 }
0x171c   :  { %3329 = vmatprep.subr.mxu1 %v3016_v10 }
0x171d   :  { %3330 = vmatpush3.msra.mxu1 %v3016_v10 }
0x171e   :  { %3331 = vmatprep.subr.mxu1 %v3015_v11 }
0x171f   :  { %3332 = vmatpush3.msra.mxu1 %v3015_v11 }
0x1720   :  { %3333 = vmatprep.subr.mxu1 %v3014_v12 }
0x1721   :  { %2615 = vrot.lane.b32.xlu1 %v4070_v56, %s3440_s16  ;;  %3334 = vmatpush3.msra.mxu1 %v3014_v12 }
0x1722   :  { %3335 = vmatprep.subr.mxu1 %v3013_v17 }
0x1723   :  { %3336 = vmatpush3.msra.mxu1 %v3013_v17 }
0x1724   :  { %3337 = vmatprep.subr.mxu1 %v3012_v14 }
0x1725   :  { %2872 = vrot.lane.b32.xlu1 %v1643_v16, %s3433_s1  ;;  %3338 = vmatpush3.msra.mxu1 %v3012_v14 }
0x1726   :  { %3339 = vmatprep.subr.mxu1 %v3011_v15 }
0x1727   :  { %3340 = vmatpush3.msra.mxu1 %v3011_v15 }
0x1728   :  { %3341 = vmatprep.subr.mxu1 %v3010_v1 }
0x1729   :  { %2874 = vrot.lane.b32.xlu1 %v1642_v23, %s3433_s1  ;;  %3342 = vmatpush3.msra.mxu1 %v3010_v1 }
0x1799   :  { %v2577_v19 = vpop.xlane.xlu1 %2576 }
0x179a   :  { %v2579_v8 = vmul.f32 0.03125, %v2577_v19 }
0x179b   :  { %v2574_v20 = vpop.xlane.xlu0 %2573 }
0x179c   :  { %v2578_v21 = vmul.f32 0.03125, %v2574_v20  ;;  %v2581_v24 = vsub.f32 %v4188_v13, %v2579_v8 }
0x179d   :  { %v2616_v54 = vpop.permute.xlu1 %2615 }
0x179e   :  { %v2580_v25 = vsub.f32 %v4193_v18, %v2578_v21  ;;  %v2583_v26 = vmul.f32 %v2581_v24, %v2581_v24 }
0x17a0   :  { %v2582_v30 = vmul.f32 %v2580_v25, %v2580_v25  ;;  %v2587_v56 = vsel %vm287_vm2, %v2583_v26, 0.0 }
0x17a2   :  { %v2584_v33 = vsel %vm283_vm1, %v2582_v30, 0.0 }
0x17a3   :  { %2585 = vadd.xlane.f32.xlu0 %v2584_v33 }
0x17a7   :  { %2588 = vadd.xlane.f32.xlu0 %v2587_v56 }
0x17bd   :  { %2613 = vrot.lane.b32.xlu0 %v4074_v5, %s3440_s16  ;;  %v3002_v5 = vld [vmem:[%s4317_s8 + $0x20] sm:$0xff] }
0x17be   :  { %3306 = vmatprep.subr.mxu0 %v3002_v5 }
0x17bf   :  { %3307 = vmatpush3.msra.mxu0 %v3002_v5 }
0x182c   :  { %v2586_v32 = vpop.xlane.xlu0 %2585 }
0x182d   :  { %v2590_v34 = vmul.f32 0.03125, %v2586_v32 }
0x182f   :  { %v2592_v35 = vadd.f32 1e-06, %v2590_v34 }
0x1830   :  { %v2589_v38 = vpop.xlane.xlu0 %2588 }
0x1831   :  { %3416 = vrsqrt.f32 %v2592_v35  ;;  %v2591_v0 = vmul.f32 0.03125, %v2589_v38 }
0x1833   :  { %v2593_v39 = vadd.f32 1e-06, %v2591_v0 }
0x1834   :  { %v2614_v50 = vpop.permute.xlu0 %2613 }
0x1835   :  { %3418 = vrsqrt.f32 %v2593_v39 }
0x183e   :  { %v3417_v48 = vpop.eup %3416 }
0x183f   :  { %v2596_v40 = vmul.f32 %v3417_v48, %v2580_v25 }
0x1841   :  { %v2602_v42 = vmul.f32 %v2601_v53, %v2596_v40 }
0x1842   :  { %v3419_v43 = vpop.eup %3418 }
0x1843   :  { %v2597_v44 = vmul.f32 %v3419_v43, %v2581_v24  ;;  %v2608_v47 = vadd.f32 %v2607_v41, %v2602_v42 }
0x1845   :  { %v2603_v22 = vmul.f32 %v2601_v53, %v2597_v44  ;;  %v2610_v31 = vmul.f32 %v2608_v47, %v1643_v16 }
0x1847   :  { %v2609_v51 = vadd.f32 %v2607_v41, %v2603_v22  ;;  %v2619_v52 = vadd.f32 %v2614_v50, %v2610_v31 }
0x1849   :  { %v2611_v37 = vmul.f32 %v2609_v51, %v1642_v23  ;;  %3308 = vmatprep.mubr.msk.f32.mxu0 %vm283_vm1, %v2619_v52 }
0x184b   :  { %v2620_v63 = vadd.f32 %v2616_v54, %v2611_v37 }
0x184d   :  { %3309 = vmatmul.mubr.msk.f32.vlgmr.msra.gmra.mxu0 %vm283_vm1, %v2620_v63 }
0x190d   :  { %v3310_v23 = vpop.f32.mrf.mxu0 }
0x190e   :  { %v2712_v16 = vadd.f32 %v3310_v23, %v3007_v45  ;;  %v2873_v23 = vpop.permute.xlu1 %2872 }
0x190f   :  { %v2706_v19 = vpop.f32.mrf.mxu0 }
0x1910   :  { %v2718_v8 = vmul.f32 0.70710677, %v2712_v16  ;;  %v2707_v20 = vadd.f32 %v3007_v45, %v2706_v19  ;;  %v2716_v14 = vmul.f32 0.5, %v2712_v16  ;;  %v2789_v45 = vrot.slane %v4062_v49, %v1427_v4 }
0x1911   :  { %v2868_v19 = vrot.slane %v4062_v49, %v1506_v2 }
0x1912   :  { %v2724_v21 = vand.u32 2147483647, %v2718_v8  ;;  %v2717_v24 = vmul.f32 0.70710677, %v2707_v20  ;;  %vm2720_vm11 = vcmp.ge.f32.partialorder %v2718_v8, 0.0  ;;  %v2715_v12 = vmul.f32 0.5, %v2707_v20 }
0x1913   :  { %v2722_v62 = vsel %vm2720_vm11, 1.0, %v3441_v46 }
0x1914   :  { %v2726_v25 = vmul.f32 0.3275911, %v2724_v21  ;;  %v2723_v30 = vand.u32 2147483647, %v2717_v24  ;;  %v2752_v27 = vsub.f32 0.0, %v2724_v21  ;;  %vm2719_vm12 = vcmp.ge.f32.partialorder %v2717_v24, 0.0 }
0x1915   :  { %v2721_v9 = vsel %vm2719_vm12, 1.0, %v3441_v46 }
0x1916   :  { %v2728_v33 = vadd.f32 1.0, %v2726_v25  ;;  %v2725_v26 = vmul.f32 0.3275911, %v2723_v30  ;;  %v2751_v28 = vsub.f32 0.0, %v2723_v30  ;;  %v2754_v29 = vmul.f32 %v2752_v27, %v2724_v21  ;;  %v2875_v25 = vpop.permute.xlu1 %2874 }
0x1918   :  { %3420 = vrcp.f32 %v2728_v33  ;;  %v2727_v56 = vadd.f32 1.0, %v2725_v26  ;;  %v2753_v32 = vmul.f32 %v2751_v28, %v2723_v30  ;;  %v2757_v35 = vmul.f32 1.442695, %v2754_v29 }
0x191a   :  { %3422 = vrcp.f32 %v2727_v56  ;;  %v2755_v39 = vmul.f32 1.442695, %v2753_v32 }
0x191b   :  { %3424 = vpow2.f32 %v2757_v35 }
0x191c   :  { %3426 = vpow2.f32 %v2755_v39 }
0x1925   :  { %v3421_v5 = vpop.eup %3420 }
0x1926   :  { %v2734_v34 = vmul.f32 1.0614054, %v3421_v5 }
0x1927   :  { %v3423_v38 = vpop.eup %3422 }
0x1928   :  { %v2736_v0 = vadd.f32 -1.4531521, %v2734_v34  ;;  %v2733_v53 = vmul.f32 1.0614054, %v3423_v38  ;;  %v3425_v54 = vpop.eup %3424 }
0x1929   :  { %v3427_v55 = vpop.eup %3426 }
0x192a   :  { %v2738_v48 = vmul.f32 %v3421_v5, %v2736_v0  ;;  %v2735_v40 = vadd.f32 -1.4531521, %v2733_v53 }
0x192c   :  { %v2740_v41 = vadd.f32 1.4214138, %v2738_v48  ;;  %v2737_v42 = vmul.f32 %v3423_v38, %v2735_v40  ;;  %v2882_v40 = vld [vmem:[%s4320_s12] sm:$0x3] }
0x192e   :  { %v2742_v43 = vmul.f32 %v3421_v5, %v2740_v41  ;;  %v2739_v44 = vadd.f32 1.4214138, %v2737_v42  ;;  %v2912_v41 = vrot.slane %v2882_v40, %v3696_v59 }
0x1930   :  { %v2744_v47 = vadd.f32 -0.28449672, %v2742_v43  ;;  %v2741_v22 = vmul.f32 %v3423_v38, %v2739_v44  ;;  %v2918_v43 = vrot.slane %v2882_v40, %v3699_v60 }
0x1932   :  { %v2746_v31 = vmul.f32 %v3421_v5, %v2744_v47  ;;  %v2743_v50 = vadd.f32 -0.28449672, %v2741_v22 }
0x1934   :  { %v2748_v51 = vadd.f32 0.2548296, %v2746_v31  ;;  %v2745_v52 = vmul.f32 %v3423_v38, %v2743_v50 }
0x1936   :  { %v2750_v37 = vmul.f32 %v3421_v5, %v2748_v51  ;;  %v2747_v63 = vadd.f32 0.2548296, %v2745_v52 }
0x1938   :  { %v2760_v3 = vmul.f32 %v3425_v54, %v2750_v37  ;;  %v2749_v36 = vmul.f32 %v3423_v38, %v2747_v63 }
0x193a   :  { %v2762_v57 = vsub.f32 1.0, %v2760_v3  ;;  %v2759_v6 = vmul.f32 %v3427_v55, %v2749_v36 }
0x193c   :  { %v2764_v7 = vmul.f32 %v2762_v57, %v2722_v62  ;;  %v2761_v61 = vsub.f32 1.0, %v2759_v6 }
0x193e   :  { %v2763_v10 = vmul.f32 %v2761_v61, %v2721_v9  ;;  %v2766_v11 = vadd.f32 1.0, %v2764_v7 }
0x1940   :  { %v2765_v17 = vadd.f32 1.0, %v2763_v10  ;;  %v2768_v1 = vmul.f32 %v2766_v11, %v2716_v14 }
0x1942   :  { %v2767_v15 = vmul.f32 %v2765_v17, %v2715_v12 }
0x1944   :  { %3343 = vmatprep.mubr.f32.mxu1 %v2767_v15 }
0x1945   :  { %3344 = vmatmul.mubr.f32.vlgmr.msra.gmra.mxu1 %v2768_v1 }
0x1a05   :  { %v3345_v8 = vpop.f32.mrf.mxu1 }
0x1a06   :  { %v2862_v46 = vadd.f32 %v3345_v8, %v2789_v45 }
0x1a07   :  { %v2856_v21 = vpop.f32.mrf.mxu1 }
0x1a08   :  { %v2870_v24 = vmul.f32 %v2868_v19, %v2862_v46  ;;  %v2857_v20 = vadd.f32 %v2856_v21, %v2789_v45 }
0x1a0a   :  { %v2869_v16 = vmul.f32 %v2868_v19, %v2857_v20  ;;  %v2879_v30 = vmul.f32 %v2875_v25, %v2870_v24 }
0x1a0c   :  { %v2881_v33 = vadd.f32 %v2879_v30, %v4188_v13  ;;  %v2878_v26 = vmul.f32 %v2873_v23, %v2869_v16 }
0x1a0e   :  { %v2886_v56 = vsel %vm287_vm2, %v2881_v33, 0.0  ;;  %v2880_v4 = vadd.f32 %v2878_v26, %v4193_v18 }
0x1a0f   :  { %2887 = vadd.xlane.f32.xlu1 %v2886_v56 }
0x1a10   :  { %v2883_v58 = vsel %vm283_vm1, %v2880_v4, 0.0 }
0x1a11   :  { %2884 = vadd.xlane.f32.xlu0 %v2883_v58 }
0x1a98   :  { %v2888_v2 = vpop.xlane.xlu1 %2887 }
0x1a99   :  { %v2890_v49 = vmul.f32 0.03125, %v2888_v2 }
0x1a9a   :  { %v2885_v27 = vpop.xlane.xlu0 %2884 }
0x1a9b   :  { %v2889_v28 = vmul.f32 0.03125, %v2885_v27  ;;  %v2892_v29 = vsub.f32 %v2881_v33, %v2890_v49 }
0x1a9d   :  { %v2891_v5 = vsub.f32 %v2880_v4, %v2889_v28  ;;  %v2894_v35 = vmul.f32 %v2892_v29, %v2892_v29 }
0x1a9f   :  { %v2893_v32 = vmul.f32 %v2891_v5, %v2891_v5  ;;  %v2898_v13 = vsel %vm287_vm2, %v2894_v35, 0.0 }
0x1aa1   :  { %v2895_v34 = vsel %vm283_vm1, %v2893_v32, 0.0 }
0x1aa2   :  { %2896 = vadd.xlane.f32.xlu0 %v2895_v34 }
0x1aa6   :  { %2899 = vadd.xlane.f32.xlu0 %v2898_v13 }
0x1b2b   :  { %v2897_v38 = vpop.xlane.xlu0 %2896 }
0x1b2c   :  { %v2901_v18 = vmul.f32 0.03125, %v2897_v38 }
0x1b2e   :  { %v2903_v0 = vadd.f32 1e-06, %v2901_v18 }
0x1b2f   :  { %v2900_v39 = vpop.xlane.xlu0 %2899 }
0x1b30   :  { %3428 = vrsqrt.f32 %v2903_v0  ;;  %v2902_v53 = vmul.f32 0.03125, %v2900_v39 }
0x1b32   :  { %v2904_v48 = vadd.f32 1e-06, %v2902_v53 }
0x1b34   :  { %3430 = vrsqrt.f32 %v2904_v48 }
0x1b3d   :  { %v3429_v42 = vpop.eup %3428 }
0x1b3e   :  { %v2907_v44 = vmul.f32 %v3429_v42, %v2891_v5 }
0x1b40   :  { %v2913_v47 = vmul.f32 %v2912_v41, %v2907_v44 }
0x1b41   :  { %v3431_v22 = vpop.eup %3430 }
0x1b42   :  { %v2919_v31 = vadd.f32 %v2918_v43, %v2913_v47  ;;  %v2908_v50 = vmul.f32 %v3431_v22, %v2892_v29 }
0x1b44   :  { %2921 = vst.msk [vmem:[%s4321_s13] sm:$0xff] %vm283_vm1, %v2919_v31  ;;  %v2914_v51 = vmul.f32 %v2912_v41, %v2908_v50 }
0x1b46   :  { %v2920_v52 = vadd.f32 %v2918_v43, %v2914_v51 }
0x1b48   :  { %2922 = vst.msk [vmem:[%s4321_s13 + $0x8] sm:$0x3] %vm287_vm2, %v2920_v52 }

</bundles_post_ra>
